<compile_context>
chip_gen: v7x
topology: tpu7x:2x2x1
jax: 0.10.0
libtpu: 0.0.40
codegen_flags: <defaults>
</compile_context>

<pallas_src>
import functools

import jax
import jax.numpy as jnp
from jax import lax
from jax.experimental import pallas as pl
from jax.experimental.pallas import tpu as pltpu


def _round_up(a, m):
    return (a + m - 1) // m * m


def _basic_conv_kernel(x_ref, w_ref, b_ref, o_ref, *, kk, stride, th):
    """One (batch element, output-row tile) grid step.

    x_ref : (stride, H_phase, W_out_p, K*Cin) bf16  phase-decomposed,
            width-im2col'ed image of this batch element (resident across t)
    w_ref : (K, K*Cin, Cout_p)                bf16  BN scale folded in
    b_ref : (1, Cout_p)                       f32   folded BN bias
    o_ref : (th, W_out_p, Cout_p)                   output rows [t*th, t*th+th)
    """
    t = pl.program_id(1)
    row0 = t * th
    w_out_p = o_ref.shape[1]
    cout_p = o_ref.shape[-1]
    kcin = x_ref.shape[-1]
    m = th * w_out_p

    # K matmuls: M = th*W_out_p, contraction = K*Cin, f32 accumulation.
    acc = jnp.zeros((m, cout_p), jnp.float32)
    for kh in range(kk):                       # K is tiny (1 or 3): static unroll
        phase = kh % stride
        off = kh // stride
        slab = x_ref[phase, pl.ds(row0 + off, th), :, :]   # (th, W_out_p, K*Cin)
        slab = slab.reshape(m, kcin)           # free: W_out_p is tile-aligned
        acc = acc + jnp.dot(slab, w_ref[kh],
                            preferred_element_type=jnp.float32)

    y = acc + b_ref[...]                        # folded BatchNorm (eval)

    # Mish: y * tanh(softplus(y)), softplus threshold = 20 like PyTorch.
    # tanh(log1p(t)) == (t^2 + 2t) / (t^2 + 2t + 2),  t = exp(min(y, 20)).
    t_e = jnp.exp(jnp.minimum(y, 20.0))
    num = t_e * (t_e + 2.0)
    den = num + 2.0
    inv = pl.reciprocal(den, approx=True)
    inv = inv * (2.0 - den * inv)               # one Newton step (VPU) for accuracy
    mish = jnp.where(y > 20.0, y, y * (num * inv))

    o_ref[...] = mish.reshape(th, w_out_p, cout_p).astype(o_ref.dtype)


def basic_conv(x_nchw, weight, gamma, beta, running_mean, running_var,
               *, stride=1, eps=1e-5, out_dtype=jnp.bfloat16):
    """BasicConv forward: Conv2d(k, stride, pad=k//2, bias=False) + BN(eval) + Mish.

    The kernel writes lane-dense bf16 NHWC; the wrapper slices padding off and
    returns NCHW in the input dtype for parity with the PyTorch module.
    """
    N, Cin, H, W = x_nchw.shape
    Cout, Cin_w, K, K2 = weight.shape
    assert Cin == Cin_w and K == K2
    pad = K // 2
    H_out = (H + 2 * pad - K) // stride + 1
    W_out = (W + 2 * pad - K) // stride + 1

    # Lane-dense output channels (128 granule; 256 granule for large Cout so a
    # full 256-wide MXU pass on v6e/v7x is used).
    granule = 256 if Cout >= 256 else 128
    Cout_p = _round_up(Cout, granule)

    # Fold BatchNorm (eval) into weight scale + bias.
    scale = gamma / jnp.sqrt(running_var + eps)                    # (Cout,)
    bias = beta - running_mean * scale                             # (Cout,)
    w = jnp.transpose(weight, (2, 3, 1, 0))                        # (Kh, Kw, Cin, Cout)
    w = w * scale[None, None, None, :]
    w = w.reshape(K, K * Cin, Cout)                                # [kh, kw*Cin + c, co]
    w = jnp.pad(w, ((0, 0), (0, 0), (0, Cout_p - Cout))).astype(jnp.bfloat16)
    b = jnp.pad(bias, (0, Cout_p - Cout)).reshape(1, Cout_p).astype(jnp.float32)

    # Row tiling: target ~256-512 output pixels per matmul (MXU M dimension).
    W_out_p = _round_up(W_out, 16)               # sublane-tile aligned (bf16)
    th = max(1, min(H_out, max(1, 512 // W_out_p)))
    num_t = -(-H_out // th)
    H_out_pad = num_t * th
    H_phase = H_out_pad + (K - 1) // stride
    rows_needed = H_phase * stride
    KCin = K * Cin

    # NCHW -> NHWC bf16, spatial zero-pad (extra bottom rows keep the last
    # row tile in-bounds).
    x = jnp.transpose(x_nchw, (0, 2, 3, 1)).astype(jnp.bfloat16)
    pad_bottom = max(rows_needed - (H + pad), 0)
    x_pad = jnp.pad(x, ((0, 0), (pad, pad_bottom), (pad, pad), (0, 0)))

    # Width-only im2col: fold kw taps (and the width stride) into the channel
    # (lane) dim -> contraction depth K*Cin, zero in-kernel shifts.
    w_span_last = (W_out - 1) * stride
    taps = [x_pad[:, :, kw:kw + w_span_last + 1:stride, :] for kw in range(K)]
    x_wcol = jnp.stack(taps, axis=3).reshape(N, x_pad.shape[1], W_out, KCin)
    x_wcol = jnp.pad(x_wcol, ((0, 0), (0, 0), (0, W_out_p - W_out), (0, 0)))

    # Phase-decompose rows by stride so the kernel only takes contiguous row
    # slices (stride>1 downsampling convs need no strided in-kernel slicing).
    x_wcol = x_wcol[:, :rows_needed]
    x_ph = x_wcol.reshape(N, H_phase, stride, W_out_p, KCin)
    x_ph = jnp.transpose(x_ph, (0, 2, 1, 3, 4))    # (N, stride, H_phase, W_out_p, K*Cin)

    kernel = functools.partial(_basic_conv_kernel, kk=K, stride=stride, th=th)

    # VMEM budget estimate (layout-padded): per-n resident input + blocks.
    x_blk = stride * H_phase * _round_up(W_out_p, 16) * _round_up(KCin, 128) * 2
    o_blk = th * W_out_p * Cout_p * 2
    w_blk = K * _round_up(KCin, 16) * Cout_p * 2 + 8 * Cout_p * 4
    acc_blk = th * W_out_p * Cout_p * 4
    need = 2 * (x_blk + o_blk) + w_blk + 2 * acc_blk
    try:
        vmem_cap = pltpu.get_tpu_info().vmem_capacity_bytes
    except Exception:
        vmem_cap = 64 << 20
    vmem_limit = int(min(max(need, 32 << 20), (vmem_cap * 3) // 4))

    cost = pl.CostEstimate(
        flops=2 * N * H_out_pad * W_out_p * Cout_p * K * KCin,
        transcendentals=2 * N * H_out_pad * W_out_p * Cout_p,
        bytes_accessed=(x_ph.size * 2 + w.size * 2 + b.size * 4
                        + N * H_out_pad * W_out_p * Cout_p * 2))

    out = pl.pallas_call(
        kernel,
        out_shape=jax.ShapeDtypeStruct((N, H_out_pad, W_out_p, Cout_p), out_dtype),
        grid=(N, num_t),
        in_specs=[
            # Full phase-decomposed image of one batch element; stays
            # VMEM-resident across all of its row tiles (index_map ignores t).
            pl.BlockSpec((None, stride, H_phase, W_out_p, KCin),
                         lambda n, t: (n, 0, 0, 0, 0)),
            pl.BlockSpec((K, KCin, Cout_p), lambda n, t: (0, 0, 0)),
            pl.BlockSpec((1, Cout_p), lambda n, t: (0, 0)),
        ],
        out_specs=pl.BlockSpec((None, th, W_out_p, Cout_p),
                               lambda n, t: (n, t, 0, 0)),
        compiler_params=pltpu.CompilerParams(
            # t "arbitrary": megacore (v7x) shards the batch axis, avoiding
            # duplication of the per-n resident image across TensorCores.
            dimension_semantics=("parallel", "arbitrary"),
            vmem_limit_bytes=vmem_limit),
        cost_estimate=cost,
    )(x_ph, w, b)

    # Drop row / column / channel padding (on the bf16 tensor), back to NCHW.
    out = out[:, :H_out, :W_out, :Cout]
    return jnp.transpose(out, (0, 3, 1, 2)).astype(x_nchw.dtype)


def _reference(x_nchw, weight, gamma, beta, running_mean, running_var,
               *, stride=1, eps=1e-5):
    """Plain-JAX reference (mirrors the kernel's bf16 operand rounding)."""
    K = weight.shape[-1]
    pad = K // 2
    scale = gamma / jnp.sqrt(running_var + eps)
    bias = beta - running_mean * scale
    xq = x_nchw.astype(jnp.bfloat16).astype(jnp.float32)
    wq = (weight * scale[:, None, None, None]).astype(jnp.bfloat16).astype(jnp.float32)
    y = lax.conv_general_dilated(
        xq, wq, window_strides=(stride, stride),
        padding=((pad, pad), (pad, pad)),
        dimension_numbers=("NCHW", "OIHW", "NCHW"),
        precision=lax.Precision.HIGHEST)
    y = y + bias[None, :, None, None]
    sp = jnp.where(y > 20.0, y, jnp.log1p(jnp.exp(jnp.minimum(y, 20.0))))
    return y * jnp.tanh(sp)


if __name__ == "__main__":
    key = jax.random.PRNGKey(0)
    k_x, k_w, k_g, k_b, k_m, k_v = jax.random.split(key, 6)

    N, Cin, H, W = 2, 4, 16, 16
    Cout, K = 8, 3

    x = jax.random.normal(k_x, (N, Cin, H, W), dtype=jnp.float32)
    weight = jax.random.normal(k_w, (Cout, Cin, K, K), dtype=jnp.float32) * 0.1
    gamma = 1.0 + 0.1 * jax.random.normal(k_g, (Cout,), dtype=jnp.float32)
    beta = 0.1 * jax.random.normal(k_b, (Cout,), dtype=jnp.float32)
    running_mean = 0.1 * jax.random.normal(k_m, (Cout,), dtype=jnp.float32)
    running_var = jnp.abs(jax.random.normal(k_v, (Cout,), dtype=jnp.float32)) + 0.5

    # Exercise both the stride=1 path and the (phase-decomposed) stride=2 path.
    for stride in (1, 2):
        out = basic_conv(x, weight, gamma, beta, running_mean, running_var,
                         stride=stride)
        out = jax.block_until_ready(out)
        ref = _reference(x, weight, gamma, beta, running_mean, running_var,
                         stride=stride)
        assert out.shape == ref.shape, (out.shape, ref.shape)
        # bf16 matmul operands + bf16 output store; f32 accumulation/epilogue.
        assert jnp.allclose(out, ref, atol=3e-2, rtol=3e-2), \
            f"mismatch vs reference (stride={stride})"

    print("KERNEL_OK")
</pallas_src>

<mosaic_0001>
module attributes {stable_mosaic.version = 11 : i64} {
  func.func @_basic_conv_kernel(%arg0: i32, %arg1: i32, %arg2: memref<1x1x18x16x12xbf16, #tpu.memory_space<vmem>>, %arg3: memref<3x12x128xbf16, #tpu.memory_space<vmem>>, %arg4: memref<1x128xf32, #tpu.memory_space<vmem>>, %arg5: memref<1x16x16x128xbf16, #tpu.memory_space<vmem>>) attributes {dimension_semantics = [#tpu.dimension_semantics<parallel>, #tpu.dimension_semantics<arbitrary>], iteration_bounds = array<i64: 2, 1>, scalar_prefetch = 0 : i64, scratch_operands = 0 : i64, tpu.core_type = #tpu.core_type<tc>, window_params = [{transform_indices = @transform_0, window_bounds = array<i64: 1, 1, 18, 16, 12>}, {pipeline_mode = #tpu.pipeline_mode<synchronous>, transform_indices = @transform_1, window_bounds = array<i64: 3, 12, 128>}, {pipeline_mode = #tpu.pipeline_mode<synchronous>, transform_indices = @transform_2, window_bounds = array<i64: 1, 128>}, {transform_indices = @transform_3, window_bounds = array<i64: 1, 16, 16, 128>}]} {
    %c16_i32 = arith.constant 16 : i32
    %0 = arith.muli %arg1, %c16_i32 : i32
    %cst = arith.constant 0.000000e+00 : f32
    %1 = vector.broadcast %cst : f32 to vector<256x128xf32>
    %c0_i32 = arith.constant 0 : i32
    %2 = arith.addi %0, %c0_i32 : i32
    %c0 = arith.constant 0 : index
    %c0_0 = arith.constant 0 : index
    %3 = arith.index_cast %2 : i32 to index
    %c0_1 = arith.constant 0 : index
    %c0_2 = arith.constant 0 : index
    %4 = vector.load %arg2[%c0, %c0_0, %3, %c0_1, %c0_2] : memref<1x1x18x16x12xbf16, #tpu.memory_space<vmem>>, vector<1x1x16x16x12xbf16>
    %5 = vector.shape_cast %4 : vector<1x1x16x16x12xbf16> to vector<16x16x12xbf16>
    %6 = vector.shape_cast %5 : vector<16x16x12xbf16> to vector<256x12xbf16>
    %c0_3 = arith.constant 0 : index
    %c0_4 = arith.constant 0 : index
    %c0_5 = arith.constant 0 : index
    %7 = vector.load %arg3[%c0_3, %c0_4, %c0_5] : memref<3x12x128xbf16, #tpu.memory_space<vmem>>, vector<1x12x128xbf16>
    %8 = vector.shape_cast %7 : vector<1x12x128xbf16> to vector<12x128xbf16>
    %cst_6 = arith.constant dense<0.000000e+00> : vector<256x128xf32>
    %9 = tpu.matmul %6, %8, %cst_6 {dimension_numbers = #tpu.dot_dimension_numbers<[1], [0], [0], [1], [0, 0, 1, 1], [], []>} : vector<256x12xbf16>, vector<12x128xbf16>, vector<256x128xf32> -> vector<256x128xf32>
    %10 = arith.addf %1, %9 : vector<256x128xf32>
    %c1_i32 = arith.constant 1 : i32
    %11 = arith.addi %0, %c1_i32 : i32
    %c0_7 = arith.constant 0 : index
    %c0_8 = arith.constant 0 : index
    %12 = arith.index_cast %11 : i32 to index
    %c0_9 = arith.constant 0 : index
    %c0_10 = arith.constant 0 : index
    %13 = vector.load %arg2[%c0_7, %c0_8, %12, %c0_9, %c0_10] : memref<1x1x18x16x12xbf16, #tpu.memory_space<vmem>>, vector<1x1x16x16x12xbf16>
    %14 = vector.shape_cast %13 : vector<1x1x16x16x12xbf16> to vector<16x16x12xbf16>
    %15 = vector.shape_cast %14 : vector<16x16x12xbf16> to vector<256x12xbf16>
    %c1 = arith.constant 1 : index
    %c0_11 = arith.constant 0 : index
    %c0_12 = arith.constant 0 : index
    %16 = vector.load %arg3[%c1, %c0_11, %c0_12] : memref<3x12x128xbf16, #tpu.memory_space<vmem>>, vector<1x12x128xbf16>
    %17 = vector.shape_cast %16 : vector<1x12x128xbf16> to vector<12x128xbf16>
    %cst_13 = arith.constant dense<0.000000e+00> : vector<256x128xf32>
    %18 = tpu.matmul %15, %17, %cst_13 {dimension_numbers = #tpu.dot_dimension_numbers<[1], [0], [0], [1], [0, 0, 1, 1], [], []>} : vector<256x12xbf16>, vector<12x128xbf16>, vector<256x128xf32> -> vector<256x128xf32>
    %19 = arith.addf %10, %18 : vector<256x128xf32>
    %c2_i32 = arith.constant 2 : i32
    %20 = arith.addi %0, %c2_i32 : i32
    %c0_14 = arith.constant 0 : index
    %c0_15 = arith.constant 0 : index
    %21 = arith.index_cast %20 : i32 to index
    %c0_16 = arith.constant 0 : index
    %c0_17 = arith.constant 0 : index
    %22 = vector.load %arg2[%c0_14, %c0_15, %21, %c0_16, %c0_17] : memref<1x1x18x16x12xbf16, #tpu.memory_space<vmem>>, vector<1x1x16x16x12xbf16>
    %23 = vector.shape_cast %22 : vector<1x1x16x16x12xbf16> to vector<16x16x12xbf16>
    %24 = vector.shape_cast %23 : vector<16x16x12xbf16> to vector<256x12xbf16>
    %c2 = arith.constant 2 : index
    %c0_18 = arith.constant 0 : index
    %c0_19 = arith.constant 0 : index
    %25 = vector.load %arg3[%c2, %c0_18, %c0_19] : memref<3x12x128xbf16, #tpu.memory_space<vmem>>, vector<1x12x128xbf16>
    %26 = vector.shape_cast %25 : vector<1x12x128xbf16> to vector<12x128xbf16>
    %cst_20 = arith.constant dense<0.000000e+00> : vector<256x128xf32>
    %27 = tpu.matmul %24, %26, %cst_20 {dimension_numbers = #tpu.dot_dimension_numbers<[1], [0], [0], [1], [0, 0, 1, 1], [], []>} : vector<256x12xbf16>, vector<12x128xbf16>, vector<256x128xf32> -> vector<256x128xf32>
    %28 = arith.addf %19, %27 : vector<256x128xf32>
    %c0_21 = arith.constant 0 : index
    %c0_22 = arith.constant 0 : index
    %29 = vector.load %arg4[%c0_21, %c0_22] : memref<1x128xf32, #tpu.memory_space<vmem>>, vector<1x128xf32>
    %30 = vector.broadcast %29 : vector<1x128xf32> to vector<256x128xf32>
    %31 = arith.addf %28, %30 : vector<256x128xf32>
    %cst_23 = arith.constant 2.000000e+01 : f32
    %32 = vector.broadcast %cst_23 : f32 to vector<256x128xf32>
    %33 = arith.minimumf %31, %32 : vector<256x128xf32>
    %34 = math.exp %33 : vector<256x128xf32>
    %cst_24 = arith.constant 2.000000e+00 : f32
    %35 = vector.broadcast %cst_24 : f32 to vector<256x128xf32>
    %36 = arith.addf %34, %35 : vector<256x128xf32>
    %37 = arith.mulf %34, %36 : vector<256x128xf32>
    %cst_25 = arith.constant 2.000000e+00 : f32
    %38 = vector.broadcast %cst_25 : f32 to vector<256x128xf32>
    %39 = arith.addf %37, %38 : vector<256x128xf32>
    %40 = tpu.reciprocal %39 {approx = true} : vector<256x128xf32> -> vector<256x128xf32>
    %41 = arith.mulf %39, %40 : vector<256x128xf32>
    %cst_26 = arith.constant 2.000000e+00 : f32
    %42 = vector.broadcast %cst_26 : f32 to vector<256x128xf32>
    %43 = arith.subf %42, %41 : vector<256x128xf32>
    %44 = arith.mulf %40, %43 : vector<256x128xf32>
    %cst_27 = arith.constant 2.000000e+01 : f32
    %45 = vector.broadcast %cst_27 : f32 to vector<256x128xf32>
    %46 = arith.cmpf ogt, %31, %45 : vector<256x128xf32>
    %47 = arith.mulf %37, %44 : vector<256x128xf32>
    %48 = arith.mulf %31, %47 : vector<256x128xf32>
    %49 = arith.select %46, %31, %48 : vector<256x128xi1>, vector<256x128xf32>
    %50 = vector.shape_cast %49 : vector<256x128xf32> to vector<16x16x128xf32>
    %51 = arith.truncf %50 : vector<16x16x128xf32> to vector<16x16x128xbf16>
    %c0_28 = arith.constant 0 : index
    %c0_29 = arith.constant 0 : index
    %c0_30 = arith.constant 0 : index
    %c0_31 = arith.constant 0 : index
    %52 = vector.load %arg5[%c0_28, %c0_29, %c0_30, %c0_31] : memref<1x16x16x128xbf16, #tpu.memory_space<vmem>>, vector<1x16x16x128xbf16>
    %53 = vector.shape_cast %52 : vector<1x16x16x128xbf16> to vector<16x16x128xbf16>
    %54 = vector.shape_cast %51 : vector<16x16x128xbf16> to vector<1x16x16x128xbf16>
    tpu.vector_store %arg5[%c0_28, %c0_29, %c0_30, %c0_31], %54 {strides = array<i32>} : memref<1x16x16x128xbf16, #tpu.memory_space<vmem>>, vector<1x16x16x128xbf16>,
    return
  }
  func.func @transform_0(%arg0: i32, %arg1: i32) -> (i32, i32, i32, i32, i32) {
    %c0_i32 = arith.constant 0 : i32
    %c0_i32_0 = arith.constant 0 : i32
    %c0_i32_1 = arith.constant 0 : i32
    %c0_i32_2 = arith.constant 0 : i32
    %c0_i32_3 = arith.constant 0 : i32
    return %arg0, %c0_i32, %c0_i32_0, %c0_i32_1, %c0_i32_2 : i32, i32, i32, i32, i32
  }
  func.func @transform_1(%arg0: i32, %arg1: i32) -> (i32, i32, i32) {
    %c0_i32 = arith.constant 0 : i32
    %c0_i32_0 = arith.constant 0 : i32
    %c0_i32_1 = arith.constant 0 : i32
    %c0_i32_2 = arith.constant 0 : i32
    return %c0_i32, %c0_i32_0, %c0_i32_1 : i32, i32, i32
  }
  func.func @transform_2(%arg0: i32, %arg1: i32) -> (i32, i32) {
    %c0_i32 = arith.constant 0 : i32
    %c0_i32_0 = arith.constant 0 : i32
    %c0_i32_1 = arith.constant 0 : i32
    return %c0_i32, %c0_i32_0 : i32, i32
  }
  func.func @transform_3(%arg0: i32, %arg1: i32) -> (i32, i32, i32, i32) {
    %c0_i32 = arith.constant 0 : i32
    %c0_i32_0 = arith.constant 0 : i32
    %c0_i32_1 = arith.constant 0 : i32
    return %arg0, %arg1, %c0_i32, %c0_i32_0 : i32, i32, i32, i32
  }
}

</mosaic_0001>

<bundles_post_ra>
// kernel: tpu_custom_call.1
= control target key start
LH: loop header
LB: loop body
LE: loop exit
PB: predicated region body
PF: predicated region fallthrough
CT: control target
= control target key end

     0   :  { %8 = vsyncpa [#allocation3], 0  ;;  %s3698_s0 = inlined_call_operand.vmem [shape: bf16[2,1,18,16,12], index: 0, kind: input, shape index: {}]   ;;  %s3699_s1 = inlined_call_operand.vmem [shape: bf16[3,12,128], index: 1, kind: input, shape index: {}]   ;;  %s3700_s2 = inlined_call_operand.vmem [shape: f32[1,128], index: 2, kind: input, shape index: {}]   ;;  %s3701_s3 = inlined_call_operand.hbm [shape: bf16[2,16,16,128], index: 3, kind: output, shape index: {}]  }
   0x1   :  { %10 = vsyncpa [#allocation3 + $0x1], 0  ;;  %s2877_s12 = smov 0   ;;  %s2879_s13 = smov 0  }
   0x2   :  { %s2881_s14 = smov 0   ;;  %s2883_s15 = smov 0  }
   0x3   :  { %s2885_s16 = smov 0   ;;  %s2887_s17 = smov 0  }
   0x4 LB: > { %s1973_s18 = sadd.s32 4294967295, %s2852_s17   ;;  %s1974_s19 = sadd.s32 4294967294, %s2852_s17   ;;  %s2852_s17 = sphi %s2887_s17, %s16_s17   ;;  %s2848_s16 = sphi %s2885_s16, %s3726_s16   ;;  %s2844_s15 = sphi %s2883_s15, %s3725_s15   ;;  %s2840_s14 = sphi %s2881_s14, %s3724_s14   ;;  %s2836_s13 = sphi %s2879_s13, %s3723_s13   ;;  %s2832_s12 = sphi %s2877_s12, %s3722_s12  }
   0x5   : > { %s28_s20 = sadd.s32 1, %s2848_s16  ;;  %s105_s21 = sadd.s32 1, %s2840_s14 }
   0x6   : > { %p30_p0 = scmp.ge.s32.totalorder %s28_s20, 2  ;;  %p115_p1 = scmp.ne.s32.totalorder %s2840_s14, %s2836_s13 }
   0x7   : > { %p116_p2 = scmp.eq.s32.totalorder %s1973_s18, 1  ;;  %p121_p3 = scmp.ne.s32.totalorder %s2836_s13, %s2832_s12 }
   0x8   : > { %s3728_s20 = smov (%p30_p0, %s28_s20), 0  ;;  %p122_p5 = scmp.eq.s32.totalorder %s1974_s19, 1 }
   0x9   : > { %p2917_p4 = por %p116_p2, %p115_p1  ;;  %s100_s23 = ssub.s32 %s2848_s16, %s3728_s20 }
   0xa   : > { %p1977_p6 = scmp.ge.s32.totalorder %s2852_s17, 1  ;;  %p103_p7 = scmp.eq.s32.totalorder %s100_s23, 0 }
   0xb   : > { %p2924_p8 = por %p122_p5, %p121_p3  ;;  %p154_p9 = scmp.lt.s32.totalorder %s2852_s17, 3 }
   0xc   : > { %s2930_s25 = scalar_select %p103_p7, %s2840_s14, %s105_s21  }
   0xd   : > { %p155_p10 = pnand %p1977_p6, %p154_p9 }
   0xf   : > { %158 = sbr.rel (%p155_p10) target bundleno = 451 (0x1c3), region = 32 }
  0x16   : > { %v2594_v0 = vld [vmem:[%s3699_s1 + $0x8] sm:$0x3f]   ;;  %vm396_vm0 = vcmask 1045504   ;;  %p178_p11 = scmp.lt.s32.totalorder %s2844_s15, 1  ;;  %v2595_v1 = vld [vmem:[%s3699_s1] sm:$0x3f]  }
  0x17   : > { %2532 = vmatprep.subr.msk.bf16.mxu1 %vm396_vm0, %v2594_v0  ;;  %v398_v2 = vsel %vm396_vm0, %v2594_v0, 0  ;;  %v2598_v3 = vld [vmem:[%s3699_s1 + $0x10] sm:$0x3f]   ;;  %2533 = vmatprep.subr.msk.bf16.mxu0 %vm396_vm0, %v2595_v1  ;;  %v695_v4 = vsel %vm396_vm0, %v2595_v1, 0  ;;  %vm347_vm1 = vcmask 97280   ;;  %s175_s18 = sand.u32 1, %s2836_s13  }
  0x18   : > { %2365 = vmatpush3.bf16.msra.mxu1 %v398_v2  ;;  %s179_s30 = scalar_select %p178_p11, %s2844_s15, 1  ;;  %2399 = vmatpush3.bf16.msra.mxu0 %v695_v4  ;;  %v1031_v9 = vsel %vm396_vm0, %v2598_v3, 0 }
  0x19   : > { %2534 = vmatprep.subr.msk.bf16.mxu1 %vm396_vm0, %v2595_v1  ;;  %2535 = vmatprep.subr.msk.bf16.mxu0 %vm396_vm0, %v2598_v3  ;;  %s3246_s19 = sshll.u32 %s175_s18, 7  ;;  %s2217_s27 = sshll.u32 %s2844_s15, 11 }
  0x1a   : > { %s2536_s6 = smul.u32 144, %s179_s30  ;;  %s3292_s21 = scalar_lea.vmem [#allocation2], %s3246_s19 }
  0x1b   : > { %s1890_s28 = sshll.u32 %s3292_s21, 4  ;;  %s3645_s4 = scalar_lea.hbm %s3701_s3, %s2217_s27  ;;  %s3647_s28 = int_to_ptr.vmem [resolvable:$true] %s1890_s28 }
  0x1c   : > { %s2952_s9 = scalar_lea.vmem %s3698_s0, %s2536_s6  ;;  %s3652_s15 = scalar_lea.sflag [#allocation3], %s175_s18 }
  0x1d   : > { %v2596_v5 = vld [vmem:[%s2952_s9 + $0x8] sm:$0xff]   ;;  %v2597_v6 = vld [vmem:[%s2952_s9] sm:$0xff]   ;;  %v2599_v7 = vld [vmem:[%s2952_s9 + $0x10] sm:$0xff]   ;;  %s2774_s5 = scalar_lea.vmem %s3647_s28, 2048  ;;  %s2854_s6 = smov [#allocation2]  }
  0x1e   : > { %2366 = vmatprep.mubr.msk.bf16.mxu1 %vm347_vm1, %v2596_v5  ;;  %2400 = vmatprep.mubr.msk.bf16.mxu0 %vm347_vm1, %v2597_v6  ;;  %v2600_v8 = vld [vmem:[%s2952_s9 + $0x8] sm:$0xff]   ;;  %v2601_v10 = vld [vmem:[%s2952_s9 + $0x18] sm:$0xff]   ;;  %v2602_v11 = vld [vmem:[%s2952_s9 + $0x10] sm:$0xff]   ;;  %p2775_p12 = scmp.ne.s32.totalorder %s3647_s28, %s2774_s5  ;;  %s2778_s7 = sshll.u32 %s2854_s6, 4  ;;  %s2779_s7 = int_to_ptr.vmem [resolvable:$false] %s2778_s7 }
  0x1f   : > { %2367 = vmatmul.mubr.msk.bf16.vlgmr.msra.gmra.mrb[0].mxu1 %vm347_vm1, %v2599_v7  ;;  %2401 = vmatmul.mubr.msk.bf16.vlgmr.msra.gmra.mrb[0].mxu0 %vm347_vm1, %v2600_v8  ;;  %v2603_v12 = vld [vmem:[%s2952_s9 + $0x20] sm:$0xff]   ;;  %v2604_v13 = vld [vmem:[%s2952_s9 + $0x18] sm:$0xff]   ;;  %v2605_v14 = vld [vmem:[%s2952_s9 + $0x28] sm:$0xff]   ;;  %s2780_s8 = scalar_lea.vmem %s2779_s7, 4096  ;;  %p2781_p1 = scmp.lt.s32.totalorder %s3647_s28, %s2779_s7 }
  0x20   : > { %2467 = vmatpush3.bf16.msra.mxu1 %v695_v4  ;;  %2433 = vmatpush3.bf16.msra.mxu0 %v1031_v9  ;;  %v2606_v15 = vld [vmem:[%s2952_s9 + $0x20] sm:$0xff]   ;;  %v2607_v16 = vld [vmem:[%s2952_s9 + $0x30] sm:$0xff]   ;;  %v2608_v17 = vld [vmem:[%s2952_s9 + $0x28] sm:$0xff]   ;;  %p2776_p13 = pnand %p2775_p12, %p2917_p4  ;;  %p2782_p2 = scmp.lt.s32.totalorder %s2780_s8, %s2774_s5 }
  0x21   : > { %2370 = vmatprep.mubr.msk.bf16.mxu1 %vm347_vm1, %v2601_v10  ;;  %2404 = vmatprep.mubr.msk.bf16.mxu0 %vm347_vm1, %v2602_v11  ;;  %v2609_v18 = vld [vmem:[%s2952_s9 + $0x38] sm:$0xff]   ;;  %v2610_v19 = vld [vmem:[%s2952_s9 + $0x30] sm:$0xff]   ;;  %v2611_v20 = vld [vmem:[%s2952_s9 + $0x40] sm:$0xff]  }
  0x22   : > { %v2612_v21 = vld [vmem:[%s2952_s9 + $0x38] sm:$0xff]   ;;  %v2613_v22 = vld [vmem:[%s2952_s9 + $0x48] sm:$0xff]   ;;  %v2614_v23 = vld [vmem:[%s2952_s9 + $0x10] sm:$0xff]   ;;  %p2777_p0 = pneg %p2776_p13  ;;  %p2783_p3 = por %p2782_p2, %p2781_p1 }
  0x23   : > { %v2615_v24 = vld [vmem:[%s2952_s9 + $0x50] sm:$0xff]   ;;  %v2616_v25 = vld [vmem:[%s2952_s9 + $0x18] sm:$0xff]   ;;  %v2618_v27 = vld [vmem:[%s2952_s9 + $0x20] sm:$0xff]  }
  0x24   : > { %v2617_v26 = vld [vmem:[%s2952_s9 + $0x58] sm:$0xff]   ;;  %v2619_v28 = vld [vmem:[%s2952_s9 + $0x60] sm:$0xff]   ;;  %v2620_v29 = vld [vmem:[%s2952_s9 + $0x28] sm:$0xff]   ;;  %p2784_p5 = pnand %p2783_p3, %p2777_p0 }
  0x25   : > { %v2621_v30 = vld [vmem:[%s2952_s9 + $0x68] sm:$0xff]   ;;  %v2622_v31 = vld [vmem:[%s2952_s9 + $0x30] sm:$0xff]   ;;  %v2624_v33 = vld [vmem:[%s2952_s9 + $0x38] sm:$0xff]  }
  0x26   : > { %v2623_v32 = vld [vmem:[%s2952_s9 + $0x70] sm:$0xff]   ;;  %v2625_v34 = vld [vmem:[%s2952_s9 + $0x78] sm:$0xff]   ;;  %v2626_v35 = vld [vmem:[%s2952_s9 + $0x40] sm:$0xff]  }
  0x27   : > { %2371 = vmatmul.mubr.msk.bf16.gmra.mrb[4].mxu1 %vm347_vm1, %v2603_v12  ;;  %2405 = vmatmul.mubr.msk.bf16.gmra.mrb[4].mxu0 %vm347_vm1, %v2604_v13  ;;  %v2627_v36 = vld [vmem:[%s2952_s9 + $0x80] sm:$0xff]   ;;  %v2628_v37 = vld [vmem:[%s2952_s9 + $0x48] sm:$0xff]   ;;  %v2630_v39 = vld [vmem:[%s2952_s9 + $0x50] sm:$0xff]  }
  0x28   : > { %2374 = vmatprep.mubr.msk.bf16.mxu1 %vm347_vm1, %v2605_v14  ;;  %2408 = vmatprep.mubr.msk.bf16.mxu0 %vm347_vm1, %v2606_v15  ;;  %v2629_v38 = vld [vmem:[%s2952_s9 + $0x40] sm:$0xff]   ;;  %v2631_v40 = vld [vmem:[%s2952_s9 + $0x48] sm:$0xff]   ;;  %v2632_v41 = vld [vmem:[%s2952_s9 + $0x58] sm:$0xff]  }
  0x29   : > { %v2633_v42 = vld [vmem:[%s2952_s9 + $0x50] sm:$0xff]   ;;  %v2634_v43 = vld [vmem:[%s2952_s9 + $0x60] sm:$0xff]   ;;  %v2635_v44 = vld [vmem:[%s2952_s9 + $0x58] sm:$0xff]  }
  0x2a   : > { %v2636_v45 = vld [vmem:[%s2952_s9 + $0x68] sm:$0xff]   ;;  %v2637_v46 = vld [vmem:[%s2952_s9 + $0x60] sm:$0xff]   ;;  %v2638_v47 = vld [vmem:[%s2952_s9 + $0x70] sm:$0xff]  }
  0x2b   : > { %v2639_v48 = vld [vmem:[%s2952_s9 + $0x68] sm:$0xff]   ;;  %v2640_v49 = vld [vmem:[%s2952_s9 + $0x78] sm:$0xff]   ;;  %v2641_v50 = vld [vmem:[%s2952_s9 + $0x70] sm:$0xff]  }
  0x2c   : > { %v2642_v51 = vld [vmem:[%s2952_s9 + $0x80] sm:$0xff]   ;;  %v2643_v52 = vld [vmem:[%s2952_s9 + $0x78] sm:$0xff]   ;;  %v2644_v53 = vld [vmem:[%s2952_s9 + $0x88] sm:$0xff]  }
  0x2d   : > { %v3064_v7 = vld [vmem:[%s3700_s2] ss:$0 sm:$0xff] }
  0x2f   : > { %2375 = vmatmul.mubr.msk.bf16.gmra.mrb[8].mxu1 %vm347_vm1, %v2607_v16  ;;  %2409 = vmatmul.mubr.msk.bf16.gmra.mrb[8].mxu0 %vm347_vm1, %v2608_v17 }
  0x30   : > { %2378 = vmatprep.mubr.msk.bf16.mxu1 %vm347_vm1, %v2609_v18  ;;  %2412 = vmatprep.mubr.msk.bf16.mxu0 %vm347_vm1, %v2610_v19 }
  0x37   : > { %2379 = vmatmul.mubr.msk.bf16.gmra.mrb[12].mxu1 %vm347_vm1, %v2611_v20  ;;  %2413 = vmatmul.mubr.msk.bf16.gmra.mrb[12].mxu0 %vm347_vm1, %v2612_v21 }
  0x38   : > { %2382 = vmatprep.mubr.msk.bf16.mxu1 %vm347_vm1, %v2613_v22  ;;  %2434 = vmatprep.mubr.msk.bf16.mxu0 %vm347_vm1, %v2614_v23 }
  0x3f   : > { %2383 = vmatmul.mubr.msk.bf16.gmra.mrb[16].mxu1 %vm347_vm1, %v2615_v24  ;;  %2435 = vmatmul.mubr.msk.bf16.vlgmr.msra.gmra.mrb[0].mxu0 %vm347_vm1, %v2616_v25 }
  0x40   : > { %2386 = vmatprep.mubr.msk.bf16.mxu1 %vm347_vm1, %v2617_v26  ;;  %2438 = vmatprep.mubr.msk.bf16.mxu0 %vm347_vm1, %v2618_v27 }
  0x47   : > { %2387 = vmatmul.mubr.msk.bf16.gmra.mrb[20].mxu1 %vm347_vm1, %v2619_v28  ;;  %2439 = vmatmul.mubr.msk.bf16.gmra.mrb[4].mxu0 %vm347_vm1, %v2620_v29 }
  0x48   : > { %2390 = vmatprep.mubr.msk.bf16.mxu1 %vm347_vm1, %v2621_v30  ;;  %2442 = vmatprep.mubr.msk.bf16.mxu0 %vm347_vm1, %v2622_v31 }
  0x4f   : > { %2391 = vmatmul.mubr.msk.bf16.gmra.mrb[24].mxu1 %vm347_vm1, %v2623_v32  ;;  %2443 = vmatmul.mubr.msk.bf16.gmra.mrb[8].mxu0 %vm347_vm1, %v2624_v33 }
  0x50   : > { %2394 = vmatprep.mubr.msk.bf16.mxu1 %vm347_vm1, %v2625_v34  ;;  %2446 = vmatprep.mubr.msk.bf16.mxu0 %vm347_vm1, %v2626_v35 }
  0x57   : > { %2395 = vmatmul.mubr.msk.bf16.gmra.mrb[28].mxu1 %vm347_vm1, %v2627_v36  ;;  %2447 = vmatmul.mubr.msk.bf16.gmra.mrb[12].mxu0 %vm347_vm1, %v2628_v37 }
  0x58   : > { %2416 = vmatprep.mubr.msk.bf16.mxu1 %vm347_vm1, %v2629_v38  ;;  %2450 = vmatprep.mubr.msk.bf16.mxu0 %vm347_vm1, %v2630_v39 }
  0x5f   : > { %2417 = vmatmul.mubr.msk.bf16.vlgmr.msra.gmra.mrb[16].mxu1 %vm347_vm1, %v2631_v40  ;;  %2451 = vmatmul.mubr.msk.bf16.gmra.mrb[16].mxu0 %vm347_vm1, %v2632_v41 }
  0x60   : > { %2420 = vmatprep.mubr.msk.bf16.mxu1 %vm347_vm1, %v2633_v42  ;;  %2454 = vmatprep.mubr.msk.bf16.mxu0 %vm347_vm1, %v2634_v43 }
  0x67   : > { %2421 = vmatmul.mubr.msk.bf16.gmra.mrb[20].mxu1 %vm347_vm1, %v2635_v44  ;;  %2455 = vmatmul.mubr.msk.bf16.gmra.mrb[20].mxu0 %vm347_vm1, %v2636_v45 }
  0x68   : > { %2424 = vmatprep.mubr.msk.bf16.mxu1 %vm347_vm1, %v2637_v46  ;;  %2458 = vmatprep.mubr.msk.bf16.mxu0 %vm347_vm1, %v2638_v47 }
  0x6f   : > { %2425 = vmatmul.mubr.msk.bf16.gmra.mrb[24].mxu1 %vm347_vm1, %v2639_v48  ;;  %2459 = vmatmul.mubr.msk.bf16.gmra.mrb[24].mxu0 %vm347_vm1, %v2640_v49 }
  0x70   : > { %2428 = vmatprep.mubr.msk.bf16.mxu1 %vm347_vm1, %v2641_v50  ;;  %2462 = vmatprep.mubr.msk.bf16.mxu0 %vm347_vm1, %v2642_v51 }
  0x77   : > { %2429 = vmatmul.mubr.msk.bf16.gmra.mrb[28].mxu1 %vm347_vm1, %v2643_v52  ;;  %2463 = vmatmul.mubr.msk.bf16.gmra.mrb[28].mxu0 %vm347_vm1, %v2644_v53 }
  0xf2   : > { %v2368_v54 = vpop.f32.mrb[0].mxu1 }
  0xf3   : > { %v434_v55 = vpop.f32.mrb[1].mxu1 }
  0xf4   : > { %v2369_v56 = vpop.f32.mrb[2].mxu1 }
  0xf5   : > { %v437_v57 = vpop.f32.mrb[3].mxu1 }
  0xfa   : > { %v2372_v58 = vpop.f32.mrb[4].mxu1 }
  0xfb   : > { %v450_v59 = vpop.f32.mrb[5].mxu1 }
  0xfc   : > { %v2373_v60 = vpop.f32.mrb[6].mxu1 }
  0xfd   : > { %v453_v61 = vpop.f32.mrb[7].mxu1 }
 0x102   : > { %v2376_v62 = vpop.f32.mrb[8].mxu1 }
 0x103   : > { %v466_v63 = vpop.f32.mrb[9].mxu1 }
 0x104   : > { %v2377_v0 = vpop.f32.mrb[10].mxu1 }
 0x105   : > { %v3051_v1 = vpop.f32.mrb[11].mxu1 }
 0x10a   : > { %v3053_v2 = vpop.f32.mrb[12].mxu1 }
 0x10b   : > { %v3055_v3 = vpop.f32.mrb[13].mxu1 }
 0x10c   : > { %v3057_v4 = vpop.f32.mrb[14].mxu1 }
 0x10d   : > { %v3059_v5 = vpop.f32.mrb[15].mxu1 }
 0x112   : > { %v2436_v6 = vpop.f32.mrb[0].mxu0 }
 0x113   : > { %v2468_v8 = vadd.f32 %v2436_v6, %v2368_v54  ;;  %v1067_v9 = vpop.f32.mrb[1].mxu0 }
 0x114   : > { %v2469_v10 = vadd.f32 %v1067_v9, %v434_v55  ;;  %v2437_v11 = vpop.f32.mrb[2].mxu0 }
 0x115   : > { %v3067_v12 = vadd.f32 %v2468_v8, %v3064_v7  ;;  %v2470_v13 = vadd.f32 %v2437_v11, %v2369_v56  ;;  %v1070_v14 = vpop.f32.mrb[3].mxu0 }
 0x116   : > { %v3070_v15 = vadd.f32 %v2469_v10, %v3064_v7  ;;  %v2471_v16 = vadd.f32 %v1070_v14, %v437_v57 }
 0x117   : > { %v1267_v17 = vmin.f32 %v3067_v12, 20.0  ;;  %v3074_v18 = vadd.f32 %v2470_v13, %v3064_v7  ;;  %vm1587_vm2 = vcmp.gt.f32.partialorder %v3067_v12, 20.0 }
 0x118   : > { %v1265_v19 = vmin.f32 %v3070_v15, 20.0  ;;  %v3078_v20 = vadd.f32 %v2471_v16, %v3064_v7  ;;  %vm1585_vm3 = vcmp.gt.f32.partialorder %v3070_v15, 20.0 }
 0x119   : > { %v1301_v21 = vmul.f32 1.442695, %v1267_v17  ;;  %v1268_v22 = vmin.f32 %v3074_v18, 20.0  ;;  %vm1588_vm4 = vcmp.gt.f32.partialorder %v3074_v18, 20.0 }
 0x11a   : > { %v1297_v23 = vmul.f32 1.442695, %v1265_v19  ;;  %v1266_v24 = vmin.f32 %v3078_v20, 20.0  ;;  %v2440_v25 = vpop.f32.mrb[4].mxu0  ;;  %vm1586_vm5 = vcmp.gt.f32.partialorder %v3078_v20, 20.0 }
 0x11b   : > { %2645 = vpow2.f32 %v1301_v21  ;;  %v1303_v26 = vmul.f32 1.442695, %v1268_v22  ;;  %v2472_v27 = vadd.f32 %v2440_v25, %v2372_v58  ;;  %v1083_v28 = vpop.f32.mrb[5].mxu0 }
 0x11c   : > { %2647 = vpow2.f32 %v1297_v23  ;;  %v1299_v29 = vmul.f32 1.442695, %v1266_v24  ;;  %v2473_v30 = vadd.f32 %v1083_v28, %v450_v59  ;;  %v2441_v31 = vpop.f32.mrb[6].mxu0 }
 0x11d   : > { %2649 = vpow2.f32 %v1303_v26  ;;  %v3083_v32 = vadd.f32 %v2472_v27, %v3064_v7  ;;  %v2474_v33 = vadd.f32 %v2441_v31, %v2373_v60  ;;  %v1086_v34 = vpop.f32.mrb[7].mxu0 }
 0x11e   : > { %2651 = vpow2.f32 %v1299_v29  ;;  %v3086_v35 = vadd.f32 %v2473_v30, %v3064_v7  ;;  %v2475_v36 = vadd.f32 %v1086_v34, %v453_v61 }
 0x11f   : > { %v1271_v37 = vmin.f32 %v3083_v32, 20.0  ;;  %v3090_v38 = vadd.f32 %v2474_v33, %v3064_v7  ;;  %vm1591_vm6 = vcmp.gt.f32.partialorder %v3083_v32, 20.0 }
 0x120   : > { %v1269_v39 = vmin.f32 %v3086_v35, 20.0  ;;  %v3094_v40 = vadd.f32 %v2475_v36, %v3064_v7  ;;  %vm1589_vm7 = vcmp.gt.f32.partialorder %v3086_v35, 20.0 }
 0x121   : > { %v1309_v41 = vmul.f32 1.442695, %v1271_v37  ;;  %v1272_v42 = vmin.f32 %v3090_v38, 20.0  ;;  %vm1592_vm8 = vcmp.gt.f32.partialorder %v3090_v38, 20.0 }
 0x122   : > { %v1305_v43 = vmul.f32 1.442695, %v1269_v39  ;;  %v1270_v44 = vmin.f32 %v3094_v40, 20.0  ;;  %v2444_v45 = vpop.f32.mrb[8].mxu0  ;;  %vm1590_vm9 = vcmp.gt.f32.partialorder %v3094_v40, 20.0 }
 0x123   : > { %2653 = vpow2.f32 %v1309_v41  ;;  %v1311_v46 = vmul.f32 1.442695, %v1272_v42  ;;  %v2476_v47 = vadd.f32 %v2444_v45, %v2376_v62  ;;  %v1099_v48 = vpop.f32.mrb[9].mxu0 }
 0x124   : > { %2655 = vpow2.f32 %v1305_v43  ;;  %v1307_v49 = vmul.f32 1.442695, %v1270_v44  ;;  %v2477_v50 = vadd.f32 %v1099_v48, %v466_v63  ;;  %v2445_v51 = vpop.f32.mrb[10].mxu0 }
 0x125   : > { %v2646_v52 = vpop.eup %2645  ;;  %2657 = vpow2.f32 %v1311_v46  ;;  %v3099_v53 = vadd.f32 %v2476_v47, %v3064_v7  ;;  %v2478_v54 = vadd.f32 %v2445_v51, %v2377_v0  ;;  %v1102_v55 = vpop.f32.mrb[11].mxu0 }
 0x126   : > { %v2648_v56 = vpop.eup %2647  ;;  %v1363_v57 = vadd.f32 2.0, %v2646_v52  ;;  %2659 = vpow2.f32 %v1307_v49  ;;  %v3102_v58 = vadd.f32 %v2477_v50, %v3064_v7  ;;  %v2479_v59 = vadd.f32 %v1102_v55, %v3051_v1 }
 0x127   : > { %v2650_v60 = vpop.eup %2649  ;;  %v1361_v61 = vadd.f32 2.0, %v2648_v56  ;;  %v1275_v62 = vmin.f32 %v3099_v53, 20.0  ;;  %v3107_v63 = vadd.f32 %v2478_v54, %v3064_v7  ;;  %vm1595_vm10 = vcmp.gt.f32.partialorder %v3099_v53, 20.0 }
 0x128   : > { %v2652_v6 = vpop.eup %2651  ;;  %v3109_v8 = vmul.f32 %v2646_v52, %v1363_v57  ;;  %v1364_v0 = vadd.f32 2.0, %v2650_v60  ;;  %v1273_v9 = vmin.f32 %v3102_v58, 20.0  ;;  %v3130_v26 = vadd.f32 %v2479_v59, %v3064_v7 }
 0x129   : > { %v3112_v10 = vmul.f32 %v2648_v56, %v1361_v61  ;;  %v1362_v11 = vadd.f32 2.0, %v2652_v6  ;;  %v1317_v13 = vmul.f32 1.442695, %v1275_v62  ;;  %v1276_v14 = vmin.f32 %v3107_v63, 20.0 }
 0x12a   : > { %v3116_v1 = vadd.f32 2.0, %v3109_v8  ;;  %v3118_v16 = vmul.f32 %v2650_v60, %v1364_v0  ;;  %v1313_v17 = vmul.f32 1.442695, %v1273_v9  ;;  %v2448_v19 = vpop.f32.mrb[12].mxu0  ;;  %v1274_v39 = vmin.f32 %v3130_v26, 20.0 }
 0x12b   : > { %v3121_v21 = vadd.f32 2.0, %v3112_v10  ;;  %v3123_v22 = vmul.f32 %v2652_v6, %v1362_v11  ;;  %2661 = vpow2.f32 %v1317_v13  ;;  %v1319_v23 = vmul.f32 1.442695, %v1276_v14  ;;  %v1115_v24 = vpop.f32.mrb[13].mxu0 }
 0x12c   : > { %2663 = vrcp.f32 %v3116_v1  ;;  %v3127_v25 = vadd.f32 2.0, %v3118_v16  ;;  %v2480_v27 = vadd.f32 %v2448_v19, %v3053_v2  ;;  %v2449_v28 = vpop.f32.mrb[14].mxu0  ;;  %v2481_v31 = vadd.f32 %v1115_v24, %v3055_v3 }
 0x12d   : > { %v2654_v29 = vpop.eup %2653  ;;  %2665 = vrcp.f32 %v3121_v21  ;;  %v3135_v30 = vadd.f32 2.0, %v3123_v22  ;;  %v2482_v33 = vadd.f32 %v2449_v28, %v3057_v4  ;;  %v1118_v34 = vpop.f32.mrb[15].mxu0  ;;  %v1315_v45 = vmul.f32 1.442695, %v1274_v39 }
 0x12e   : > { %v2656_v36 = vpop.eup %2655  ;;  %2667 = vrcp.f32 %v3127_v25  ;;  %v1367_v37 = vadd.f32 2.0, %v2654_v29  ;;  %v3143_v42 = vadd.f32 %v2480_v27, %v3064_v7  ;;  %v3146_v43 = vadd.f32 %v2481_v31, %v3064_v7 }
 0x12f   : > { %v2658_v41 = vpop.eup %2657  ;;  %2669 = vrcp.f32 %v3135_v30  ;;  %v1365_v2 = vadd.f32 2.0, %v2656_v36  ;;  %v3175_v6 = vadd.f32 %v2482_v33, %v3064_v7  ;;  %vm1593_vm11 = vcmp.gt.f32.partialorder %v3102_v58, 20.0 }
 0x130   : > { %v2660_v3 = vpop.eup %2659  ;;  %v3148_v44 = vmul.f32 %v2654_v29, %v1367_v37  ;;  %v1368_v4 = vadd.f32 2.0, %v2658_v41  ;;  %2671 = vpow2.f32 %v1313_v17  ;;  %v1279_v48 = vmin.f32 %v3143_v42, 20.0 }
 0x131   : > { %v3150_v46 = vmul.f32 %v2656_v36, %v1365_v2  ;;  %v1366_v47 = vadd.f32 2.0, %v2660_v3  ;;  %2673 = vpow2.f32 %v1319_v23  ;;  %v1277_v57 = vmin.f32 %v3146_v43, 20.0  ;;  %3708 = vst [vmem:[#allocation5_spill] sm:$0xff] %v3175_v6 }
 0x132   : > { %v2418_v49 = vpop.f32.mrb[16].mxu1  ;;  %v3154_v50 = vadd.f32 2.0, %v3148_v44  ;;  %v3156_v51 = vmul.f32 %v2658_v41, %v1368_v4  ;;  %2675 = vpow2.f32 %v1315_v45  ;;  %v2452_v52 = vpop.f32.mrb[16].mxu0  ;;  %v1325_v62 = vmul.f32 1.442695, %v1279_v48 }
 0x133   : > { %v3158_v54 = vpop.f32.mrb[17].mxu1  ;;  %v3161_v55 = vadd.f32 2.0, %v3150_v46  ;;  %v3163_v56 = vmul.f32 %v2660_v3, %v1366_v47  ;;  %v3166_v59 = vpop.f32.mrb[17].mxu0  ;;  %v1321_v14 = vmul.f32 1.442695, %v1277_v57  ;;  %v2483_v17 = vadd.f32 %v1118_v34, %v3059_v5 }
 0x134   : > { %v3168_v60 = vpop.f32.mrb[18].mxu1  ;;  %2677 = vrcp.f32 %v3154_v50  ;;  %v3172_v61 = vadd.f32 2.0, %v3156_v51  ;;  %v3177_v0 = vpop.f32.mrb[18].mxu0  ;;  %v1280_v27 = vmin.f32 %v3175_v6, 20.0  ;;  %v3195_v33 = vadd.f32 %v2452_v52, %v2418_v49 }
 0x135   : > { %v3179_v9 = vpop.f32.mrb[19].mxu1  ;;  %v2662_v11 = vpop.eup %2661  ;;  %2679 = vrcp.f32 %v3161_v55  ;;  %v3183_v13 = vadd.f32 2.0, %v3163_v56  ;;  %v3193_v31 = vadd.f32 %v2483_v17, %v3064_v7  ;;  %vm1596_vm12 = vcmp.gt.f32.partialorder %v3107_v63, 20.0 }
 0x136   : > { %v3186_v19 = vpop.f32.mrb[19].mxu0  ;;  %v2664_v23 = vpop.eup %2663  ;;  %2681 = vrcp.f32 %v3172_v61  ;;  %v1371_v24 = vadd.f32 2.0, %v2662_v11  ;;  %v1327_v37 = vmul.f32 1.442695, %v1280_v27  ;;  %vm1594_vm13 = vcmp.gt.f32.partialorder %v3130_v26, 20.0 }
 0x137   : > { %v2666_v28 = vpop.eup %2665  ;;  %v1491_v29 = vmul.f32 %v2664_v23, %v3116_v1  ;;  %2683 = vrcp.f32 %v3183_v13  ;;  %3709 = vst [vmem:[#allocation6_spill] sm:$0xff] %v3193_v31  ;;  %v1278_v2 = vmin.f32 %v3193_v31, 20.0  ;;  %vm1599_vm14 = vcmp.gt.f32.partialorder %v3143_v42, 20.0 }
 0x138   : > { %v2668_v36 = vpop.eup %2667  ;;  %v1489_v5 = vmul.f32 %v2666_v28, %v3121_v21  ;;  %v3199_v34 = vmul.f32 %v2662_v11, %v1371_v24  ;;  %2685 = vpow2.f32 %v1325_v62  ;;  %vm1597_vm15 = vcmp.gt.f32.partialorder %v3146_v43, 20.0 }
 0x139   : > { %v2670_v39 = vpop.eup %2669  ;;  %v1523_v41 = vsub.f32 2.0, %v1491_v29  ;;  %v1492_v1 = vmul.f32 %v2668_v36, %v3127_v25  ;;  %2687 = vpow2.f32 %v1321_v14  ;;  %v1323_v11 = vmul.f32 1.442695, %v1278_v2 }
 0x13a   : > { %v3204_v3 = vpop.f32.mrb[20].mxu1  ;;  %v2672_v4 = vpop.eup %2671  ;;  %v1521_v45 = vsub.f32 2.0, %v1489_v5  ;;  %v1490_v21 = vmul.f32 %v2670_v39, %v3135_v30  ;;  %v3209_v47 = vadd.f32 2.0, %v3199_v34  ;;  %2689 = vpow2.f32 %v1327_v37 }
 0x13b   : > { %v3211_v48 = vpop.f32.mrb[20].mxu0  ;;  %v3213_v49 = vpop.f32.mrb[21].mxu1  ;;  %v1555_v52 = vmul.f32 %v2664_v23, %v1523_v41  ;;  %v1524_v57 = vsub.f32 2.0, %v1492_v1  ;;  %v1369_v62 = vadd.f32 2.0, %v2672_v4 }
 0x13c   : > { %v2674_v25 = vpop.eup %2673  ;;  %v3216_v14 = vpop.f32.mrb[21].mxu0  ;;  %v1553_v24 = vmul.f32 %v2666_v28, %v1521_v45  ;;  %v1522_v27 = vsub.f32 2.0, %v1490_v21  ;;  %2691 = vrcp.f32 %v3209_v47 }
 0x13d   : > { %v3218_v17 = vpop.f32.mrb[22].mxu1  ;;  %v3220_v30 = vpop.eup %2675  ;;  %v1372_v29 = vadd.f32 2.0, %v2674_v25  ;;  %v1619_v23 = vmul.f32 %v1555_v52, %v3109_v8  ;;  %v1556_v41 = vmul.f32 %v2668_v36, %v1524_v57  ;;  %v3229_v1 = vmul.f32 %v2672_v4, %v1369_v62 }
 0x13e   : > { %v3223_v5 = vpop.f32.mrb[22].mxu0  ;;  %v3225_v37 = vpop.f32.mrb[23].mxu1  ;;  %v1370_v2 = vadd.f32 2.0, %v3220_v30  ;;  %v1617_v45 = vmul.f32 %v1553_v24, %v3112_v10  ;;  %v1554_v21 = vmul.f32 %v2670_v39, %v1522_v27  ;;  %2693 = vpow2.f32 %v1323_v11 }
 0x13f   : > { %3710 = vst [vmem:[#allocation7_spill] sm:$0xff] %v3223_v5  ;;  %3711 = vst [vmem:[#allocation8_spill] sm:$0xff] %v3225_v37  ;;  %v3232_v31 = vpop.f32.mrb[23].mxu0  ;;  %v2678_v28 = vpop.eup %2677  ;;  %v3235_v6 = vmul.f32 %v2674_v25, %v1372_v29  ;;  %v1651_v37 = vmul.f32 %v1619_v23, %v3067_v12  ;;  %v1620_v8 = vmul.f32 %v1556_v41, %v3118_v16  ;;  %v3241_v4 = vadd.f32 2.0, %v3229_v1 }
 0x140   : > { %v2680_v5 = vpop.eup %2679  ;;  %v1495_v36 = vmul.f32 %v2678_v28, %v3154_v50  ;;  %v1649_v57 = vmul.f32 %v1617_v45, %v3070_v15  ;;  %v1618_v10 = vmul.f32 %v1554_v21, %v3123_v22 }
 0x141   : > { %v2682_v52 = vpop.eup %2681  ;;  %v1493_v39 = vmul.f32 %v2680_v5, %v3161_v55  ;;  %v3251_v25 = vadd.f32 2.0, %v3235_v6  ;;  %v1683_v16 = vsel %vm1587_vm2, %v3067_v12, %v1651_v37  ;;  %v1652_v50 = vmul.f32 %v1620_v8, %v3074_v18 }
 0x142   : > { %v2684_v62 = vpop.eup %2683  ;;  %v1527_v11 = vsub.f32 2.0, %v1495_v36  ;;  %v1496_v24 = vmul.f32 %v2682_v52, %v3172_v61  ;;  %v3259_v27 = vpop.f32.mrb[24].mxu1  ;;  %v1681_v55 = vsel %vm1585_vm3, %v3070_v15, %v1649_v57  ;;  %v1650_v29 = vmul.f32 %v1618_v10, %v3078_v20 }
 0x143   : > { %v2686_v22 = vpop.eup %2685  ;;  %v1525_v23 = vsub.f32 2.0, %v1493_v39  ;;  %v1494_v12 = vmul.f32 %v2684_v62, %v3183_v13  ;;  %v3268_v37 = vpop.f32.mrb[24].mxu0  ;;  %v1684_v45 = vsel %vm1588_vm4, %v3074_v18, %v1652_v50  ;;  %2695 = vrcp.f32 %v3241_v4 }
 0x144   : > { %3712 = vst [vmem:[#allocation9_spill] sm:$0xff] %v3268_v37  ;;  %v3270_v41 = vpop.f32.mrb[25].mxu1  ;;  %v2688_v61 = vpop.eup %2687  ;;  %v1559_v21 = vmul.f32 %v2678_v28, %v1527_v11  ;;  %v1528_v15 = vsub.f32 2.0, %v1496_v24  ;;  %v2226_v13 = vpack.c.bf16 %v1684_v45, %v1683_v16  ;;  %v1682_v10 = vsel %vm1586_vm5, %v3078_v20, %v1650_v29 }
 0x145   : > { %3713 = vst [vmem:[#allocation10_spill] sm:$0xff] %v3270_v41  ;;  %v3276_v8 = vpop.f32.mrb[25].mxu0  ;;  %v3278_v36 = vpop.f32.mrb[26].mxu1  ;;  %v1557_v39 = vmul.f32 %v2680_v5, %v1525_v23  ;;  %v1526_v41 = vsub.f32 2.0, %v1494_v12  ;;  %v2221_v28 = vpack.c.bf16 %v1682_v10, %v1681_v55  ;;  %2697 = vrcp.f32 %v3251_v25 }
 0x146   : > { %3714 = vst [vmem:[#allocation11_spill] sm:$0xff] %v3278_v36  ;;  %v2690_v57 = vpop.eup %2689  ;;  %v3283_v37 = vpop.f32.mrb[26].mxu0  ;;  %v1623_v50 = vmul.f32 %v1559_v21, %v3148_v44  ;;  %v1560_v11 = vmul.f32 %v2682_v52, %v1528_v15  ;;  %2298 = vst [vmem:[%s3292_s21 + $0x8] sm:$0xff] %v2226_v13   ;;  %v3297_v16 = vmul.f32 %v3220_v30, %v1370_v2  ;;  %v1375_v55 = vadd.f32 2.0, %v2686_v22 }
 0x147   : > { %v3285_v18 = vpop.f32.mrb[27].mxu1  ;;  %v3289_v24 = vpop.f32.mrb[27].mxu0  ;;  %v1621_v20 = vmul.f32 %v1557_v39, %v3150_v46  ;;  %v1558_v5 = vmul.f32 %v2684_v62, %v1526_v41  ;;  %2222 = vst [vmem:[%s3292_s21] sm:$0xff] %v2221_v28   ;;  %v1373_v23 = vadd.f32 2.0, %v2688_v61  ;;  %v1376_v39 = vadd.f32 2.0, %v2690_v57 }
 0x148   : > { %v2692_v36 = vpop.eup %2691  ;;  %v1655_v44 = vmul.f32 %v1623_v50, %v3083_v32  ;;  %v1624_v52 = vmul.f32 %v1560_v11, %v3156_v51  ;;  %v3306_v46 = vadd.f32 2.0, %v3297_v16  ;;  %v3308_v62 = vmul.f32 %v2686_v22, %v1375_v55 }
 0x149   : > { %v1499_v29 = vmul.f32 %v2692_v36, %v3209_v47  ;;  %v2694_v12 = vpop.eup %2693  ;;  %v1653_v45 = vmul.f32 %v1621_v20, %v3086_v35  ;;  %v1622_v21 = vmul.f32 %v1558_v5, %v3163_v56  ;;  %v3312_v41 = vmul.f32 %v2688_v61, %v1373_v23 }
 0x14a   : > { %v1656_v30 = vmul.f32 %v1624_v52, %v3090_v38  ;;  %v3314_v51 = vpop.f32.mrb[28].mxu1  ;;  %v1687_v47 = vsel %vm1591_vm6, %v3083_v32, %v1655_v44  ;;  %2699 = vrcp.f32 %v3306_v46  ;;  %v3322_v22 = vadd.f32 2.0, %v3308_v62  ;;  %v3324_v15 = vpop.f32.mrb[28].mxu0 }
 0x14b   : > { %v1531_v2 = vsub.f32 2.0, %v1499_v29  ;;  %v1654_v56 = vmul.f32 %v1622_v21, %v3094_v40  ;;  %v3326_v13 = vpop.f32.mrb[29].mxu1  ;;  %v1685_v61 = vsel %vm1589_vm7, %v3086_v35, %v1653_v45  ;;  %v3335_v32 = vadd.f32 2.0, %v3312_v41  ;;  %v3337_v28 = vpop.f32.mrb[29].mxu0 }
 0x14c   : > { %v1688_v10 = vsel %vm1592_vm8, %v3090_v38, %v1656_v30  ;;  %v3339_v50 = vpop.f32.mrb[30].mxu1  ;;  %2701 = vrcp.f32 %v3322_v22  ;;  %v1374_v35 = vadd.f32 2.0, %v2694_v12  ;;  %v3345_v5 = vpop.f32.mrb[30].mxu0  ;;  %v3350_v29 = vmul.f32 %v2690_v57, %v1376_v39 }
 0x14d   : > { %v2236_v11 = vpack.c.bf16 %v1688_v10, %v1687_v47  ;;  %v1686_v20 = vsel %vm1590_vm9, %v3094_v40, %v1654_v56  ;;  %v3347_v38 = vpop.f32.mrb[31].mxu1  ;;  %v2696_v55 = vpop.eup %2695  ;;  %v1563_v52 = vmul.f32 %v2692_v36, %v1531_v2  ;;  %2703 = vrcp.f32 %v3335_v32 }
 0x14e   : > { %v2231_v44 = vpack.c.bf16 %v1686_v20, %v1685_v61  ;;  %v3352_v23 = vpop.f32.mrb[31].mxu0  ;;  %v1497_v40 = vmul.f32 %v2696_v55, %v3241_v4  ;;  %v3356_v45 = vmul.f32 %v2694_v12, %v1374_v35  ;;  %v3360_v21 = vadd.f32 %v3195_v33, %v3064_v7 }
 0x14f   : > { %2300 = vst [vmem:[%s3292_s21 + $0x18] sm:$0xff] %v2236_v11   ;;  %v2698_v30 = vpop.eup %2697  ;;  %v1440_v47 = vadd.f32 2.0, %v3350_v29  ;;  %v2485_v36 = vadd.f32 %v3166_v59, %v3158_v54  ;;  %v2486_v57 = vadd.f32 %v3177_v0, %v3168_v60  ;;  %v1627_v33 = vmul.f32 %v1563_v52, %v3199_v34 }
 0x150   : > { %2299 = vst [vmem:[%s3292_s21 + $0x10] sm:$0xff] %v2231_v44   ;;  %v1529_v2 = vsub.f32 2.0, %v1497_v40  ;;  %v1500_v56 = vmul.f32 %v2698_v30, %v3251_v25  ;;  %v1438_v4 = vadd.f32 2.0, %v3356_v45  ;;  %v1283_v12 = vmin.f32 %v3360_v21, 20.0 }
 0x151   : > { %2705 = vrcp.f32 %v1440_v47  ;;  %v3374_v61 = vadd.f32 %v2485_v36, %v3064_v7  ;;  %v3380_v0 = vadd.f32 %v2486_v57, %v3064_v7  ;;  %v2487_v34 = vadd.f32 %v3186_v19, %v3179_v9 }
 0x152   : > { %v1561_v10 = vmul.f32 %v2696_v55, %v1529_v2  ;;  %v1532_v54 = vsub.f32 2.0, %v1500_v56  ;;  %2707 = vrcp.f32 %v1438_v4  ;;  %v1333_v59 = vmul.f32 1.442695, %v1283_v12 }
 0x153   : > { %v1281_v60 = vmin.f32 %v3374_v61, 20.0  ;;  %v2488_v20 = vadd.f32 %v3211_v48, %v3204_v3  ;;  %v1659_v35 = vmul.f32 %v1627_v33, %v3099_v53  ;;  %v1284_v52 = vmin.f32 %v3380_v0, 20.0 }
 0x154   : > { %v2700_v25 = vpop.eup %2699  ;;  %v1625_v39 = vmul.f32 %v1561_v10, %v3229_v1  ;;  %v1564_v11 = vmul.f32 %v2698_v30, %v1532_v54  ;;  %2709 = vpow2.f32 %v1333_v59  ;;  %v3393_v19 = vadd.f32 %v2487_v34, %v3064_v7 }
 0x155   : > { %v1498_v55 = vmul.f32 %v2700_v25, %v3306_v46  ;;  %v1329_v44 = vmul.f32 1.442695, %v1281_v60  ;;  %v3396_v1 = vadd.f32 %v2488_v20, %v3064_v7  ;;  %v1335_v46 = vmul.f32 1.442695, %v1284_v52 }
 0x156   : > { %v2702_v40 = vpop.eup %2701  ;;  %v1657_v36 = vmul.f32 %v1625_v39, %v3102_v58  ;;  %v1628_v9 = vmul.f32 %v1564_v11, %v3235_v6  ;;  %v1282_v6 = vmin.f32 %v3393_v19, 20.0  ;;  %v1691_v56 = vsel %vm1595_vm10, %v3099_v53, %v1659_v35 }
 0x157   : > { %v2704_v30 = vpop.eup %2703  ;;  %v1530_v3 = vsub.f32 2.0, %v1498_v55  ;;  %v1503_v48 = vmul.f32 %v2702_v40, %v3322_v22  ;;  %2711 = vpow2.f32 %v1329_v44  ;;  %vm1603_vm2 = vcmp.gt.f32.partialorder %v3360_v21, 20.0 }
 0x158   : > { %v1660_v57 = vmul.f32 %v1628_v9, %v3107_v63  ;;  %v1501_v2 = vmul.f32 %v2704_v30, %v3335_v32  ;;  %2713 = vpow2.f32 %v1335_v46  ;;  %v1331_v54 = vmul.f32 1.442695, %v1282_v6  ;;  %v3717_v6 = vld [vmem:[#allocation6_spill] sm:$0xff] }
 0x159   : > { %v1562_v12 = vmul.f32 %v2700_v25, %v1530_v3  ;;  %v1535_v33 = vsub.f32 2.0, %v1503_v48  ;;  %v1287_v32 = vmin.f32 %v3396_v1, 20.0  ;;  %v1689_v60 = vsel %vm1593_vm11, %v3102_v58, %v1657_v36  ;;  %v3715_v36 = vld [vmem:[#allocation7_spill] sm:$0xff] }
 0x15a   : > { %v1692_v22 = vsel %vm1596_vm12, %v3107_v63, %v1660_v57  ;;  %v1533_v10 = vsub.f32 2.0, %v1501_v2  ;;  %2715 = vpow2.f32 %v1331_v54  ;;  %v2489_v58 = vadd.f32 %v3216_v14, %v3213_v49  ;;  %v3716_v49 = vld [vmem:[#allocation5_spill] sm:$0xff] }
 0x15b   : > { %v2706_v59 = vpop.eup %2705  ;;  %v2246_v53 = vpack.c.bf16 %v1692_v22, %v1691_v56  ;;  %v1626_v34 = vmul.f32 %v1562_v12, %v3297_v16  ;;  %v1567_v25 = vmul.f32 %v2702_v40, %v1535_v33  ;;  %v1341_v20 = vmul.f32 1.442695, %v1287_v32 }
 0x15c   : > { %v2708_v39 = vpop.eup %2707  ;;  %v1565_v11 = vmul.f32 %v2704_v30, %v1533_v10  ;;  %v1504_v63 = vmul.f32 %v2706_v59, %v1440_v47  ;;  %v2490_v47 = vadd.f32 %v3715_v36, %v3218_v17  ;;  %vm1600_vm0 = vcmp.gt.f32.partialorder %v3716_v49, 20.0 }
 0x15d   : > { %2302 = vst [vmem:[%s3292_s21 + $0x28] sm:$0xff] %v2246_v53   ;;  %v1658_v35 = vmul.f32 %v1626_v34, %v3130_v26  ;;  %v1631_v55 = vmul.f32 %v1567_v25, %v3308_v62  ;;  %v1502_v44 = vmul.f32 %v2708_v39, %v1438_v4  ;;  %2717 = vpow2.f32 %v1341_v20 }
 0x15e   : > { %v2710_v52 = vpop.eup %2709  ;;  %v1629_v16 = vmul.f32 %v1565_v11, %v3312_v41  ;;  %v1536_v40 = vsub.f32 2.0, %v1504_v63  ;;  %v3430_v14 = vadd.f32 %v2489_v58, %v3064_v7  ;;  %v3436_v2 = vadd.f32 %v2490_v47, %v3064_v7  ;;  %v3719_v47 = vld [vmem:[#allocation9_spill] sm:$0xff] }
 0x15f   : > { %v1690_v9 = vsel %vm1594_vm13, %v3130_v26, %v1658_v35  ;;  %v1663_v30 = vmul.f32 %v1631_v55, %v3143_v42  ;;  %v1534_v62 = vsub.f32 2.0, %v1502_v44  ;;  %v1379_v4 = vadd.f32 2.0, %v2710_v52 }
 0x160   : > { %v2241_v3 = vpack.c.bf16 %v1690_v9, %v1689_v60  ;;  %v1568_v48 = vmul.f32 %v2706_v59, %v1536_v40  ;;  %v1661_v46 = vmul.f32 %v1629_v16, %v3146_v43  ;;  %vm1598_vm1 = vcmp.gt.f32.partialorder %v3717_v6, 20.0 }
 0x161   : > { %v2712_v41 = vpop.eup %2711  ;;  %v1566_v57 = vmul.f32 %v2708_v39, %v1534_v62  ;;  %v3433_v17 = vmul.f32 %v2710_v52, %v1379_v4  ;;  %v1285_v12 = vmin.f32 %v3430_v14, 20.0  ;;  %v1695_v22 = vsel %vm1599_vm14, %v3143_v42, %v1663_v30  ;;  %v3718_v52 = vld [vmem:[#allocation8_spill] sm:$0xff]  ;;  %v3720_v30 = vld [vmem:[#allocation10_spill] sm:$0xff] }
 0x162   : > { %2301 = vst [vmem:[%s3292_s21 + $0x20] sm:$0xff] %v2241_v3   ;;  %v1632_v26 = vmul.f32 %v1568_v48, %v3350_v29  ;;  %v1377_v56 = vadd.f32 2.0, %v2712_v41  ;;  %v2714_v33 = vpop.eup %2713  ;;  %v1288_v32 = vmin.f32 %v3436_v2, 20.0  ;;  %v1693_v34 = vsel %vm1597_vm15, %v3146_v43, %v1661_v46  ;;  %v3721_v3 = vld [vmem:[#allocation11_spill] sm:$0xff] }
 0x163   : > { %v1630_v10 = vmul.f32 %v1566_v57, %v3356_v45  ;;  %v1443_v54 = vadd.f32 2.0, %v3433_v17  ;;  %v1380_v29 = vadd.f32 2.0, %v2714_v33  ;;  %v1337_v53 = vmul.f32 1.442695, %v1285_v12 }
 0x164   : > { %v1664_v59 = vmul.f32 %v1632_v26, %v3716_v49  ;;  %v3449_v60 = vmul.f32 %v2712_v41, %v1377_v56  ;;  %v1343_v42 = vmul.f32 1.442695, %v1288_v32  ;;  %v2716_v45 = vpop.eup %2715  ;;  %v2491_v16 = vadd.f32 %v3232_v31, %v3718_v52 }
 0x165   : > { %v1662_v25 = vmul.f32 %v1630_v10, %v3717_v6  ;;  %2719 = vrcp.f32 %v1443_v54  ;;  %v3459_v63 = vmul.f32 %v2714_v33, %v1380_v29  ;;  %v1378_v35 = vadd.f32 2.0, %v2716_v45 }
 0x166   : > { %v1696_v39 = vsel %vm1600_vm0, %v3716_v49, %v1664_v59  ;;  %v1441_v11 = vadd.f32 2.0, %v3449_v60  ;;  %2721 = vpow2.f32 %v1337_v53  ;;  %v2492_v9 = vadd.f32 %v3719_v47, %v3259_v27 }
 0x167   : > { %v2256_v20 = vpack.c.bf16 %v1696_v39, %v1695_v22  ;;  %v1694_v43 = vsel %vm1598_vm1, %v3717_v6, %v1662_v25  ;;  %2723 = vpow2.f32 %v1343_v42  ;;  %v2718_v55 = vpop.eup %2717  ;;  %v1444_v58 = vadd.f32 2.0, %v3459_v63 }
 0x168   : > { %v2251_v44 = vpack.c.bf16 %v1694_v43, %v1693_v34  ;;  %2725 = vrcp.f32 %v1441_v11  ;;  %v3468_v40 = vmul.f32 %v2716_v45, %v1378_v35  ;;  %v1383_v36 = vadd.f32 2.0, %v2718_v55 }
 0x169   : > { %2304 = vst [vmem:[%s3292_s21 + $0x38] sm:$0xff] %v2256_v20   ;;  %v2493_v62 = vadd.f32 %v3276_v8, %v3720_v30  ;;  %2727 = vrcp.f32 %v1444_v58  ;;  %v3476_v4 = vadd.f32 %v2491_v16, %v3064_v7  ;;  %v2494_v48 = vadd.f32 %v3283_v37, %v3721_v3 }
 0x16a   : > { %2303 = vst [vmem:[%s3292_s21 + $0x30] sm:$0xff] %v2251_v44   ;;  %v2495_v31 = vadd.f32 %v3289_v24, %v3285_v18  ;;  %v1442_v49 = vadd.f32 2.0, %v3468_v40  ;;  %v3483_v41 = vmul.f32 %v2718_v55, %v1383_v36  ;;  %v3486_v27 = vadd.f32 %v2492_v9, %v3064_v7 }
 0x16b   : > { %v3489_v8 = vadd.f32 %v2493_v62, %v3064_v7  ;;  %v1286_v46 = vmin.f32 %v3476_v4, 20.0  ;;  %v3493_v57 = vadd.f32 %v2494_v48, %v3064_v7  ;;  %v2496_v20 = vadd.f32 %v3324_v15, %v3314_v51 }
 0x16c   : > { %v3496_v37 = vadd.f32 %v2495_v31, %v3064_v7  ;;  %2729 = vrcp.f32 %v1442_v49  ;;  %v1447_v18 = vadd.f32 2.0, %v3483_v41  ;;  %v1291_v24 = vmin.f32 %v3486_v27, 20.0 }
 0x16d   : > { %v1339_v26 = vmul.f32 1.442695, %v1286_v46  ;;  %v1289_v6 = vmin.f32 %v3489_v8, 20.0  ;;  %v1292_v56 = vmin.f32 %v3493_v57, 20.0  ;;  %v3512_v16 = vadd.f32 %v2496_v20, %v3064_v7 }
 0x16e   : > { %2731 = vrcp.f32 %v1447_v18  ;;  %v1349_v33 = vmul.f32 1.442695, %v1291_v24  ;;  %v1290_v22 = vmin.f32 %v3496_v37, 20.0  ;;  %vm1601_vm3 = vcmp.gt.f32.partialorder %v3374_v61, 20.0 }
 0x16f   : > { %v2720_v12 = vpop.eup %2719  ;;  %2733 = vpow2.f32 %v1339_v26  ;;  %v1345_v59 = vmul.f32 1.442695, %v1289_v6  ;;  %v1351_v29 = vmul.f32 1.442695, %v1292_v56  ;;  %vm1604_vm4 = vcmp.gt.f32.partialorder %v3380_v0, 20.0 }
 0x170   : > { %v2722_v10 = vpop.eup %2721  ;;  %v1507_v32 = vmul.f32 %v2720_v12, %v1443_v54  ;;  %2735 = vpow2.f32 %v1349_v33  ;;  %v1347_v25 = vmul.f32 1.442695, %v1290_v22  ;;  %v2497_v54 = vadd.f32 %v3337_v28, %v3326_v13 }
 0x171   : > { %v2724_v53 = vpop.eup %2723  ;;  %v1381_v34 = vadd.f32 2.0, %v2722_v10  ;;  %2737 = vpow2.f32 %v1345_v59  ;;  %v1295_v28 = vmin.f32 %v3512_v16, 20.0  ;;  %vm1602_vm5 = vcmp.gt.f32.partialorder %v3393_v19, 20.0 }
 0x172   : > { %v2726_v42 = vpop.eup %2725  ;;  %v1539_v45 = vsub.f32 2.0, %v1507_v32  ;;  %v1384_v39 = vadd.f32 2.0, %v2724_v53  ;;  %2739 = vpow2.f32 %v1351_v29  ;;  %v3518_v51 = vadd.f32 %v2497_v54, %v3064_v7 }
 0x173   : > { %v1505_v43 = vmul.f32 %v2726_v42, %v1441_v11  ;;  %v3505_v35 = vmul.f32 %v2722_v10, %v1381_v34  ;;  %v2728_v55 = vpop.eup %2727  ;;  %2741 = vpow2.f32 %v1347_v25  ;;  %v1357_v48 = vmul.f32 1.442695, %v1295_v28 }
 0x174   : > { %v1571_v44 = vmul.f32 %v2720_v12, %v1539_v45  ;;  %v3509_v52 = vmul.f32 %v2724_v53, %v1384_v39  ;;  %v1508_v47 = vmul.f32 %v2728_v55, %v1444_v58  ;;  %v1293_v3 = vmin.f32 %v3518_v51, 20.0 }
 0x175   : > { %v1537_v36 = vsub.f32 2.0, %v1505_v43  ;;  %v3515_v9 = vadd.f32 2.0, %v3505_v35  ;;  %v2498_v29 = vadd.f32 %v3345_v5, %v3339_v50  ;;  %vm1607_vm6 = vcmp.gt.f32.partialorder %v3396_v1, 20.0 }
 0x176   : > { %v1635_v15 = vmul.f32 %v1571_v44, %v3433_v17  ;;  %v1448_v13 = vadd.f32 2.0, %v3509_v52  ;;  %v2730_v11 = vpop.eup %2729  ;;  %v1540_v62 = vsub.f32 2.0, %v1508_v47  ;;  %v1353_v46 = vmul.f32 1.442695, %v1293_v3 }
 0x177   : > { %v1569_v30 = vmul.f32 %v2726_v42, %v1537_v36  ;;  %2743 = vrcp.f32 %v3515_v9  ;;  %v1506_v58 = vmul.f32 %v2730_v11, %v1442_v49  ;;  %vm1608_vm7 = vcmp.gt.f32.partialorder %v3436_v2, 20.0 }
 0x178   : > { %2745 = vrcp.f32 %v1448_v13  ;;  %v2732_v7 = vpop.eup %2731  ;;  %v1667_v31 = vmul.f32 %v1635_v15, %v3360_v21  ;;  %v1572_v17 = vmul.f32 %v2728_v55, %v1540_v62  ;;  %vm1605_vm8 = vcmp.gt.f32.partialorder %v3430_v14, 20.0 }
 0x179   : > { %v2734_v24 = vpop.eup %2733  ;;  %v1633_v26 = vmul.f32 %v1569_v30, %v3449_v60  ;;  %v1538_v6 = vsub.f32 2.0, %v1506_v58  ;;  %v1511_v56 = vmul.f32 %v2732_v7, %v1447_v18  ;;  %2747 = vpow2.f32 %v1357_v48 }
 0x17a   : > { %v2736_v12 = vpop.eup %2735  ;;  %v1636_v49 = vmul.f32 %v1572_v17, %v3459_v63  ;;  %v1382_v33 = vadd.f32 2.0, %v2734_v24  ;;  %2749 = vpow2.f32 %v1353_v46  ;;  %v1699_v60 = vsel %vm1603_vm2, %v3360_v21, %v1667_v31 }
 0x17b   : > { %v2738_v22 = vpop.eup %2737  ;;  %v1570_v10 = vmul.f32 %v2730_v11, %v1538_v6  ;;  %v1543_v32 = vsub.f32 2.0, %v1511_v56  ;;  %v1387_v59 = vadd.f32 2.0, %v2736_v12  ;;  %v1665_v42 = vmul.f32 %v1633_v26, %v3374_v61 }
 0x17c   : > { %v2740_v53 = vpop.eup %2739  ;;  %v1668_v18 = vmul.f32 %v1636_v49, %v3380_v0  ;;  %v3538_v34 = vmul.f32 %v2734_v24, %v1382_v33  ;;  %v1385_v63 = vadd.f32 2.0, %v2738_v22  ;;  %vm1606_vm9 = vcmp.gt.f32.partialorder %v3476_v4, 20.0 }
 0x17d   : > { %v2742_v25 = vpop.eup %2741  ;;  %v1634_v45 = vmul.f32 %v1570_v10, %v3468_v40  ;;  %v3542_v39 = vmul.f32 %v2736_v12, %v1387_v59  ;;  %v1388_v20 = vadd.f32 2.0, %v2740_v53  ;;  %v1575_v44 = vmul.f32 %v2732_v7, %v1543_v32 }
 0x17e   : > { %v1700_v50 = vsel %vm1604_vm4, %v3380_v0, %v1668_v18  ;;  %v1446_v5 = vadd.f32 2.0, %v3538_v34  ;;  %v3548_v21 = vmul.f32 %v2738_v22, %v1385_v63  ;;  %v1386_v43 = vadd.f32 2.0, %v2742_v25 }
 0x17f   : > { %v2266_v54 = vpack.c.bf16 %v1700_v50, %v1699_v60  ;;  %v1666_v55 = vmul.f32 %v1634_v45, %v3393_v19  ;;  %v1451_v36 = vadd.f32 2.0, %v3542_v39  ;;  %v3553_v15 = vmul.f32 %v2740_v53, %v1388_v20 }
 0x180   : > { %2751 = vrcp.f32 %v1446_v5  ;;  %v1449_v47 = vadd.f32 2.0, %v3548_v21  ;;  %v3555_v28 = vmul.f32 %v2742_v25, %v1386_v43  ;;  %v1697_v11 = vsel %vm1601_vm3, %v3374_v61, %v1665_v42  ;;  %v2773_v61 = vld [vmem:[%s3700_s2] ss:$0 sm:$0xff] }
 0x181   : > { %v2744_v40 = vpop.eup %2743  ;;  %2306 = vst [vmem:[%s3292_s21 + $0x48] sm:$0xff] %v2266_v54   ;;  %v1698_v30 = vsel %vm1602_vm5, %v3393_v19, %v1666_v55  ;;  %2753 = vrcp.f32 %v1451_v36  ;;  %v1452_v48 = vadd.f32 2.0, %v3553_v15  ;;  %v1639_v31 = vmul.f32 %v1575_v44, %v3483_v41 }
 0x182   : > { %v2746_v0 = vpop.eup %2745  ;;  %v1509_v62 = vmul.f32 %v2744_v40, %v3515_v9  ;;  %v2261_v3 = vpack.c.bf16 %v1698_v30, %v1697_v11  ;;  %2755 = vrcp.f32 %v1449_v47  ;;  %v1450_v17 = vadd.f32 2.0, %v3555_v28 }
 0x183   : > { %v1512_v58 = vmul.f32 %v2746_v0, %v1448_v13  ;;  %v2748_v7 = vpop.eup %2747  ;;  %v3571_v46 = vadd.f32 %v2773_v61, %v2498_v29  ;;  %2757 = vrcp.f32 %v1452_v48  ;;  %v2499_v13 = vadd.f32 %v3352_v23, %v3347_v38 }
 0x184   : > { %v2750_v19 = vpop.eup %2749  ;;  %2305 = vst [vmem:[%s3292_s21 + $0x40] sm:$0xff] %v2261_v3   ;;  %v1391_v24 = vadd.f32 2.0, %v2748_v7  ;;  %v1541_v26 = vsub.f32 2.0, %v1509_v62  ;;  %2759 = vrcp.f32 %v1450_v17  ;;  %v1671_v22 = vmul.f32 %v1639_v31, %v3396_v1 }
 0x185   : > { %v1544_v9 = vsub.f32 2.0, %v1512_v58  ;;  %v1296_v41 = vmin.f32 %v3571_v46, 20.0  ;;  %v1389_v56 = vadd.f32 2.0, %v2750_v19  ;;  %v3577_v12 = vadd.f32 %v2773_v61, %v2499_v13 }
 0x186   : > { %v3579_v49 = vmul.f32 %v2748_v7, %v1391_v24  ;;  %v1573_v59 = vmul.f32 %v2744_v40, %v1541_v26  ;;  %v1703_v25 = vsel %vm1607_vm6, %v3396_v1, %v1671_v22  ;;  %vm1611_vm10 = vcmp.gt.f32.partialorder %v3486_v27, 20.0 }
 0x187   : > { %v1576_v6 = vmul.f32 %v2746_v0, %v1544_v9  ;;  %v1359_v33 = vmul.f32 1.442695, %v1296_v41  ;;  %v1294_v32 = vmin.f32 %v3577_v12, 20.0  ;;  %v3585_v29 = vmul.f32 %v2750_v19, %v1389_v56 }
 0x188   : > { %v3590_v63 = vadd.f32 2.0, %v3579_v49  ;;  %v1637_v20 = vmul.f32 %v1573_v59, %v3505_v35  ;;  %vm1609_vm11 = vcmp.gt.f32.partialorder %v3489_v8, 20.0  ;;  %vm1612_vm12 = vcmp.gt.f32.partialorder %v3493_v57, 20.0 }
 0x189   : > { %v1640_v10 = vmul.f32 %v1576_v6, %v3509_v52  ;;  %2761 = vpow2.f32 %v1359_v33  ;;  %v1355_v53 = vmul.f32 1.442695, %v1294_v32  ;;  %v1453_v40 = vadd.f32 2.0, %v3585_v29 }
 0x18a   : > { %v2752_v38 = vpop.eup %2751  ;;  %vm1610_vm13 = vcmp.gt.f32.partialorder %v3496_v37, 20.0  ;;  %vm1615_vm14 = vcmp.gt.f32.partialorder %v3512_v16, 20.0  ;;  %vm1616_vm15 = vcmp.gt.f32.partialorder %v3571_v46, 20.0  ;;  %vm1613_vm0 = vcmp.gt.f32.partialorder %v3518_v51, 20.0 }
 0x18b   : > { %v1672_v23 = vmul.f32 %v1640_v10, %v3436_v2  ;;  %v2754_v60 = vpop.eup %2753  ;;  %v1510_v18 = vmul.f32 %v2752_v38, %v1446_v5  ;;  %2763 = vpow2.f32 %v1355_v53  ;;  %vm1614_vm1 = vcmp.gt.f32.partialorder %v3577_v12, 20.0 }
 0x18c   : > { %v2756_v52 = vpop.eup %2755  ;;  %v1515_v45 = vmul.f32 %v2754_v60, %v1451_v36  ;;  %2765 = vrcp.f32 %v3590_v63  ;;  %v1669_v36 = vmul.f32 %v1637_v20, %v3430_v14 }
 0x18d   : > { %v1704_v42 = vsel %vm1608_vm7, %v3436_v2, %v1672_v23  ;;  %v1542_v43 = vsub.f32 2.0, %v1510_v18  ;;  %v1513_v54 = vmul.f32 %v2756_v52, %v1449_v47  ;;  %v2758_v55 = vpop.eup %2757  ;;  %2767 = vrcp.f32 %v1453_v40 }
 0x18e   : > { %v2276_v50 = vpack.c.bf16 %v1704_v42, %v1703_v25  ;;  %v1547_v44 = vsub.f32 2.0, %v1515_v45  ;;  %v2760_v5 = vpop.eup %2759  ;;  %v1516_v30 = vmul.f32 %v2758_v55, %v1452_v48 }
 0x18f   : > { %v1574_v0 = vmul.f32 %v2752_v38, %v1542_v43  ;;  %v1545_v11 = vsub.f32 2.0, %v1513_v54  ;;  %v1514_v2 = vmul.f32 %v2760_v5, %v1450_v17 }
 0x190   : > { %2308 = vst [vmem:[%s3292_s21 + $0x58] sm:$0xff] %v2276_v50   ;;  %v1579_v1 = vmul.f32 %v2754_v60, %v1547_v44  ;;  %v1548_v3 = vsub.f32 2.0, %v1516_v30 }
 0x191   : > { %v1638_v35 = vmul.f32 %v1574_v0, %v3538_v34  ;;  %v1577_v62 = vmul.f32 %v2756_v52, %v1545_v11  ;;  %v1546_v58 = vsub.f32 2.0, %v1514_v2  ;;  %v1701_v34 = vsel %vm1605_vm8, %v3430_v14, %v1669_v36 }
 0x192   : > { %v1643_v47 = vmul.f32 %v1579_v1, %v3542_v39  ;;  %v1580_v48 = vmul.f32 %v2758_v55, %v1548_v3 }
 0x193   : > { %v2762_v7 = vpop.eup %2761  ;;  %v1670_v31 = vmul.f32 %v1638_v35, %v3476_v4  ;;  %v1641_v61 = vmul.f32 %v1577_v62, %v3548_v21  ;;  %v1578_v17 = vmul.f32 %v2760_v5, %v1546_v58 }
 0x194   : > { %v1392_v19 = vadd.f32 2.0, %v2762_v7  ;;  %v1675_v39 = vmul.f32 %v1643_v47, %v3486_v27  ;;  %v1644_v24 = vmul.f32 %v1580_v48, %v3553_v15 }
 0x195   : > { %v1702_v9 = vsel %vm1606_vm9, %v3476_v4, %v1670_v31  ;;  %v2764_v13 = vpop.eup %2763  ;;  %v1673_v21 = vmul.f32 %v1641_v61, %v3489_v8  ;;  %v1642_v41 = vmul.f32 %v1578_v17, %v3555_v28 }
 0x196   : > { %v2271_v26 = vpack.c.bf16 %v1702_v9, %v1701_v34  ;;  %v1676_v6 = vmul.f32 %v1644_v24, %v3493_v57  ;;  %v1424_v56 = vmul.f32 %v2762_v7, %v1392_v19  ;;  %v1390_v4 = vadd.f32 2.0, %v2764_v13  ;;  %v2766_v15 = vpop.eup %2765 }
 0x197   : > { %v1674_v14 = vmul.f32 %v1642_v41, %v3496_v37  ;;  %v1707_v33 = vsel %vm1611_vm10, %v3486_v27, %v1675_v39  ;;  %v1705_v10 = vsel %vm1609_vm11, %v3489_v8, %v1673_v21  ;;  %v2768_v53 = vpop.eup %2767  ;;  %v1519_v60 = vmul.f32 %v2766_v15, %v3590_v63 }
 0x198   : > { %2307 = vst [vmem:[%s3292_s21 + $0x50] sm:$0xff] %v2271_v26   ;;  %v1708_v28 = vsel %vm1612_vm12, %v3493_v57, %v1676_v6  ;;  %v1456_v22 = vadd.f32 2.0, %v1424_v56  ;;  %v1422_v38 = vmul.f32 %v2764_v13, %v1390_v4  ;;  %v1517_v27 = vmul.f32 %v2768_v53, %v1453_v40 }
 0x199   : > { %v2286_v32 = vpack.c.bf16 %v1708_v28, %v1707_v33  ;;  %v1706_v59 = vsel %vm1610_vm13, %v3496_v37, %v1674_v14  ;;  %v1551_v57 = vsub.f32 2.0, %v1519_v60 }
 0x19a   : > { %v2281_v23 = vpack.c.bf16 %v1706_v59, %v1705_v10  ;;  %2769 = vrcp.f32 %v1456_v22  ;;  %v1454_v18 = vadd.f32 2.0, %v1422_v38  ;;  %v1549_v52 = vsub.f32 2.0, %v1517_v27 }
 0x19b   : > { %2310 = vst [vmem:[%s3292_s21 + $0x68] sm:$0xff] %v2286_v32   ;;  %v1583_v25 = vmul.f32 %v2766_v15, %v1551_v57 }
 0x19c   : > { %2309 = vst [vmem:[%s3292_s21 + $0x60] sm:$0xff] %v2281_v23   ;;  %2771 = vrcp.f32 %v1454_v18  ;;  %v1581_v8 = vmul.f32 %v2768_v53, %v1549_v52 }
 0x19d   : > { %v1647_v37 = vmul.f32 %v1583_v25, %v3579_v49 }
 0x19e   : > { %v1645_v63 = vmul.f32 %v1581_v8, %v3585_v29 }
 0x19f   : > { %v1679_v44 = vmul.f32 %v1647_v37, %v3512_v16 }
 0x1a0   : > { %v1677_v11 = vmul.f32 %v1645_v63, %v3518_v51 }
 0x1a1   : > { %v1711_v30 = vsel %vm1615_vm14, %v3512_v16, %v1679_v44 }
 0x1a2   : > { %v1709_v36 = vsel %vm1613_vm0, %v3518_v51, %v1677_v11 }
 0x1a4   : > { %v2770_v42 = vpop.eup %2769 }
 0x1a5   : > { %v1520_v45 = vmul.f32 %v2770_v42, %v1456_v22 }
 0x1a6   : > { %v2772_v20 = vpop.eup %2771 }
 0x1a7   : > { %v1552_v50 = vsub.f32 2.0, %v1520_v45  ;;  %v1518_v43 = vmul.f32 %v2772_v20, %v1454_v18 }
 0x1a9   : > { %v1584_v54 = vmul.f32 %v2770_v42, %v1552_v50  ;;  %v1550_v55 = vsub.f32 2.0, %v1518_v43 }
 0x1ab   : > { %v1648_v40 = vmul.f32 %v1584_v54, %v1424_v56  ;;  %v1582_v5 = vmul.f32 %v2772_v20, %v1550_v55 }
 0x1ad   : > { %v1680_v0 = vmul.f32 %v1648_v40, %v3571_v46  ;;  %v1646_v49 = vmul.f32 %v1582_v5, %v1422_v38 }
 0x1af   : > { %v1712_v29 = vsel %vm1616_vm15, %v3571_v46, %v1680_v0  ;;  %v1678_v2 = vmul.f32 %v1646_v49, %v3577_v12 }
 0x1b0   : > { %v2296_v1 = vpack.c.bf16 %v1712_v29, %v1711_v30 }
 0x1b1   : > { %v1710_v35 = vsel %vm1614_vm1, %v3577_v12, %v1678_v2 }
 0x1b2   : > { %2312 = vst [vmem:[%s3292_s21 + $0x78] sm:$0xff] %v2296_v1   ;;  %v2291_v16 = vpack.c.bf16 %v1710_v35, %v1709_v36 }
 0x1b4   : > { %2311 = vst [vmem:[%s3292_s21 + $0x70] sm:$0xff] %v2291_v16  }
 0x1b5   : > { %2787 = shalt.err (!%p2784_p5)
}
 0x1b6   : > { %s2788_s9 = scalar_lea.hbm %s3645_s4, 2048  ;;  %s2792_s18 = scalar_lea.hbm %s3701_s3, 4096 }
 0x1b7   : > { %p2789_p6 = scmp.ne.s32.totalorder %s3645_s4, %s2788_s9  ;;  %p2793_p10 = scmp.lt.u32.totalorder %s3645_s4, %s3701_s3 }
 0x1b8   : > { %p2794_p11 = scmp.lt.u32.totalorder %s2792_s18, %s2788_s9  ;;  %p2796_p13 = scmp.lt.u32.totalorder %s2788_s9, %s3645_s4 }
 0x1b9   : > { %p2790_p7 = pnand %p2789_p6, %p2917_p4 }
 0x1ba   : > { %p2795_p12 = por %p2794_p11, %p2793_p10 }
 0x1bb   : > { %p2791_p9 = pneg %p2790_p7 }
 0x1bc   : > { %p2797_p0 = por %p2796_p13, %p2795_p12 }
 0x1be   : > { %p2798_p1 = pnand %p2797_p0, %p2791_p9 }
 0x1c0   : > { %2801 = shalt.err (!%p2798_p1)
}
 0x1c1   : > { %s2855_s23 = smov 64   ;;  %s2856_s26 = smov 4  }
 0x1c2   : > { %2537 = dma.vmem_to_hbm [thread:$0]  (%p2917_p4), %s3647_s28, 2048, %s3645_s4, %s3652_s15, %s2855_s23, %s2855_s23, %s2856_s26  }
 0x1c3 PF: > { %p2543_p2 = scmp.ge.s32.totalorder %s2852_s17, 2  ;;  %s1905_s27 = sand.u32 1, %s2832_s12  }
 0x1c4   : > { %s1906_s29 = scalar_lea.sflag [#allocation3], %s1905_s27 }
 0x1c5   : > { %p2540_p3 = pnand %p2543_p2, %p2924_p8 }
 0x1c7   : > { %2827 = dma.done.wait (!%p2540_p3), %s1906_s29, 2048  }
 0x1c8   : > { %2829 = vsyncadd (!%p2540_p3), %s1906_s29, 4294965248  ;;  %s16_s17 = sadd.s32 1, %s2852_s17   ;;  %s3722_s12 = smov %s2836_s13 }
 0x1c9   : > { %p13_p5 = scmp.ge.s32.totalorder %s16_s17, 4   ;;  %s3723_s13 = smov %s2840_s14 }
 0x1ca   : > { %s3724_s14 = smov %s2930_s25  ;;  %s3725_s15 = smov %s2848_s16 }
 0x1cb   : > { %s3726_s16 = smov %s3728_s20  ;;  %15 = sbr.rel (!%p13_p5) target bundleno = 4 (0x4), region = 72 }
 0x1d2   :  { %1911 = vsyncpa [#allocation3], 1 }
 0x1d3   :  { %1913 = vsyncpa [#allocation3 + $0x1], 1 }

</bundles_post_ra>
